<compile_context>
chip_gen: v5e
topology: v5e:2x2
jax: 0.10.0
libtpu: 0.0.40
codegen_flags: <defaults>
</compile_context>

<pallas_src>
import functools
import math

import jax
import jax.numpy as jnp
import numpy as np
from jax import lax
from jax.experimental import pallas as pl
from jax.experimental.pallas import tpu as pltpu


# --------------------------------------------------------------------------
# Cluster contrastive loss + entropy regularizer (tiny: (2C)^2 elements).
# Runs inside the fused kernel on plain VMEM values; f32 throughout.
# --------------------------------------------------------------------------
def _cluster_loss_value(ci, cj, *, class_num, temp_clu):
    cnum = class_num
    inv_t = jnp.float32(1.0 / temp_clu)

    # ne_loss = ne_i + ne_j (negative-entropy regularizers on cluster usage).
    # Small clamp avoids 0 * log(0) = NaN for underflowed cluster mass.
    p_i = jnp.sum(ci, axis=0, keepdims=True)
    p_i = jnp.maximum(p_i / jnp.sum(p_i), 1e-12)
    ne_i = jnp.float32(math.log(cnum)) + jnp.sum(p_i * jnp.log(p_i))
    p_j = jnp.sum(cj, axis=0, keepdims=True)
    p_j = jnp.maximum(p_j / jnp.sum(p_j), 1e-12)
    ne_j = jnp.float32(math.log(cnum)) + jnp.sum(p_j * jnp.log(p_j))

    # Column-normalize in f32 (norms from the inputs, not from the gram diag);
    # grams of normalized columns are the cosine similarities directly.
    # (Equivalent to torch CosineSimilarity up to degenerate near-zero norms.)
    inv_n_i = lax.rsqrt(jnp.maximum(jnp.sum(ci * ci, axis=0, keepdims=True), 1e-16))
    inv_n_j = lax.rsqrt(jnp.maximum(jnp.sum(cj * cj, axis=0, keepdims=True), 1e-16))
    ci_n = ci * inv_n_i
    cj_n = cj * inv_n_j

    dn = (((0,), (0,)), ((), ()))  # contract over the batch axis
    sim_ii = lax.dot_general(ci_n, ci_n, dn, preferred_element_type=jnp.float32) * inv_t
    sim_ij = lax.dot_general(ci_n, cj_n, dn, preferred_element_type=jnp.float32) * inv_t
    sim_ji = lax.dot_general(cj_n, ci_n, dn, preferred_element_type=jnp.float32) * inv_t
    sim_jj = lax.dot_general(cj_n, cj_n, dn, preferred_element_type=jnp.float32) * inv_t

    r = lax.broadcasted_iota(jnp.int32, (cnum, cnum), 0)
    c = lax.broadcasted_iota(jnp.int32, (cnum, cnum), 1)
    neg_big = jnp.float32(-1e30)
    sim_ii_m = jnp.where(r == c, neg_big, sim_ii)   # exclude self-similarity
    sim_jj_m = jnp.where(r == c, neg_big, sim_jj)

    # CrossEntropy(reduction='sum') with label 0, where row k's logits are
    # [positive_k, negatives_k] == all sims of row k except the diagonal:
    #   CE_k = logsumexp_{l != k} sim[k, l] - sim[k, pos_k]
    m_i = jnp.maximum(jnp.max(sim_ii_m, axis=1, keepdims=True),
                      jnp.max(sim_ij, axis=1, keepdims=True))
    d_i = (jnp.sum(jnp.exp(sim_ii_m - m_i), axis=1, keepdims=True) +
           jnp.sum(jnp.exp(sim_ij - m_i), axis=1, keepdims=True))
    lse_i = m_i + jnp.log(d_i)

    m_j = jnp.maximum(jnp.max(sim_jj_m, axis=1, keepdims=True),
                      jnp.max(sim_ji, axis=1, keepdims=True))
    d_j = (jnp.sum(jnp.exp(sim_jj_m - m_j), axis=1, keepdims=True) +
           jnp.sum(jnp.exp(sim_ji - m_j), axis=1, keepdims=True))
    lse_j = m_j + jnp.log(d_j)

    # Positives sim[k, k±C] = cos(c_i[:, k], c_j[:, k]) / T — closed form.
    pos = jnp.sum(ci_n * cj_n, axis=0, keepdims=True) * inv_t          # (1, C)

    cluster_loss = (jnp.sum(lse_i) + jnp.sum(lse_j) - 2.0 * jnp.sum(pos)) \
        / jnp.float32(2 * cnum)
    return cluster_loss + ne_i + ne_j


# --------------------------------------------------------------------------
# Fused kernel: tiled online-softmax instance loss + (once) cluster loss.
# Grid: (qb over B//T query blocks, kb over B//T key blocks).
# Query/key blocks cover BOTH halves (z_i rows and z_j rows) simultaneously.
# --------------------------------------------------------------------------
def _fused_contrastive_kernel(qzi_ref, qzj_ref, kzi_ref, kzj_ref, ci_ref, cj_ref,
                              out_ref, m_a, l_a, m_b, l_b,
                              *, class_num, temp_ins, temp_clu):
    qb = pl.program_id(0)
    kb = pl.program_id(1)
    nkb = pl.num_programs(1)
    inv_t = jnp.float32(1.0 / temp_ins)

    @pl.when(kb == 0)
    def _init():
        m_a[...] = jnp.full(m_a.shape, -jnp.inf, dtype=jnp.float32)
        m_b[...] = jnp.full(m_b.shape, -jnp.inf, dtype=jnp.float32)
        l_a[...] = jnp.zeros(l_a.shape, dtype=jnp.float32)
        l_b[...] = jnp.zeros(l_b.shape, dtype=jnp.float32)

    # Single-pass bf16 MXU matmuls with f32 accumulation.
    qa = qzi_ref[...].astype(jnp.bfloat16)   # (T, D) query rows from z_i (half A)
    qc = qzj_ref[...].astype(jnp.bfloat16)   # (T, D) query rows from z_j (half B)
    ka = kzi_ref[...].astype(jnp.bfloat16)   # (T, D) key rows from z_i
    kc = kzj_ref[...].astype(jnp.bfloat16)   # (T, D) key rows from z_j
    dn = (((1,), (1,)), ((), ()))            # A @ B^T
    s_aa = lax.dot_general(qa, ka, dn, preferred_element_type=jnp.float32) * inv_t
    s_ab = lax.dot_general(qa, kc, dn, preferred_element_type=jnp.float32) * inv_t
    s_ba = lax.dot_general(qc, ka, dn, preferred_element_type=jnp.float32) * inv_t
    s_bb = lax.dot_general(qc, kc, dn, preferred_element_type=jnp.float32) * inv_t

    # Self-similarity entries live only in the AA / BB quadrants when qb == kb;
    # they are included in the row-max (reference semantics) but excluded from
    # the exp-sum (logits_mask).  Tile-local mask only — never (2B, 2B).
    tsz = s_aa.shape[0]
    rr = lax.broadcasted_iota(jnp.int32, (tsz, tsz), 0)
    cc = lax.broadcasted_iota(jnp.int32, (tsz, tsz), 1)
    diag_keep = jnp.where((rr == cc) & (qb == kb), 0.0, 1.0)

    # Online softmax, half A (query rows from z_i).
    row_max_a = jnp.maximum(jnp.max(s_aa, axis=1, keepdims=True),
                            jnp.max(s_ab, axis=1, keepdims=True))
    m_new_a = jnp.maximum(m_a[...], row_max_a)
    alpha_a = jnp.exp(m_a[...] - m_new_a)
    p_sum_a = (jnp.sum(jnp.exp(s_aa - m_new_a) * diag_keep, axis=1, keepdims=True) +
               jnp.sum(jnp.exp(s_ab - m_new_a), axis=1, keepdims=True))
    l_a[...] = alpha_a * l_a[...] + p_sum_a
    m_a[...] = m_new_a

    # Online softmax, half B (query rows from z_j).
    row_max_b = jnp.maximum(jnp.max(s_ba, axis=1, keepdims=True),
                            jnp.max(s_bb, axis=1, keepdims=True))
    m_new_b = jnp.maximum(m_b[...], row_max_b)
    alpha_b = jnp.exp(m_b[...] - m_new_b)
    p_sum_b = (jnp.sum(jnp.exp(s_ba - m_new_b), axis=1, keepdims=True) +
               jnp.sum(jnp.exp(s_bb - m_new_b) * diag_keep, axis=1, keepdims=True))
    l_b[...] = alpha_b * l_b[...] + p_sum_b
    m_b[...] = m_new_b

    @pl.when(kb == nkb - 1)
    def _finalize():
        # Positive logits sim[r, r±B] = <z_i[r], z_j[r]> / T, identical for both
        # halves of each query block; computed in f32 from the inputs (O(T·D)).
        pos_sum = jnp.sum(qzi_ref[...].astype(jnp.float32) *
                          qzj_ref[...].astype(jnp.float32)) * inv_t
        # per-row loss = m + log(denom) - pos; summed over the 2T rows of this block
        inst_partial = (jnp.sum(m_a[...] + jnp.log(l_a[...])) +
                        jnp.sum(m_b[...] + jnp.log(l_b[...])) -
                        2.0 * pos_sum)
        # Tiny cluster + entropy loss, fused into this launch; only the qb == 0
        # block's value is kept (hidden under the MXU-bound instance phase).
        clu = jnp.where(
            qb == 0,
            _cluster_loss_value(ci_ref[...].astype(jnp.float32),
                                cj_ref[...].astype(jnp.float32),
                                class_num=class_num, temp_clu=temp_clu),
            0.0)
        # Lane-dense output row: lane 0 = instance partial sum, lane 1 = cluster.
        lane = lax.broadcasted_iota(jnp.int32, out_ref.shape, 2)
        out_ref[...] = jnp.where(lane == 0, inst_partial,
                                 jnp.where(lane == 1, clu, 0.0)).astype(jnp.float32)


def _pick_tile(b, max_tile=256):
    for t in (max_tile, 128, 64, 32, 16, 8):
        if t <= b and b % t == 0:
            return t
    return b  # fall back to a single block along that axis


# --------------------------------------------------------------------------
# Wrapper
# --------------------------------------------------------------------------
def contrastive_loss_forward(z_i, z_j, c_i, c_j, *, class_num,
                             temperature_ins, temperature_clu, max_tile=256):
    z_i = z_i.astype(jnp.float32)
    z_j = z_j.astype(jnp.float32)
    c_i = c_i.astype(jnp.float32)
    c_j = c_j.astype(jnp.float32)
    b, d = z_i.shape
    tile = _pick_tile(b, max_tile)
    nqb = b // tile
    nkb = b // tile

    kernel = functools.partial(
        _fused_contrastive_kernel,
        class_num=class_num,
        temp_ins=float(temperature_ins),
        temp_clu=float(temperature_clu))

    grid_spec = pltpu.PrefetchScalarGridSpec(
        num_scalar_prefetch=0,
        grid=(nqb, nkb),
        in_specs=[
            pl.BlockSpec((tile, d), lambda qb, kb: (qb, 0)),           # z_i query rows
            pl.BlockSpec((tile, d), lambda qb, kb: (qb, 0)),           # z_j query rows
            pl.BlockSpec((tile, d), lambda qb, kb: (kb, 0)),           # z_i key rows
            pl.BlockSpec((tile, d), lambda qb, kb: (kb, 0)),           # z_j key rows
            pl.BlockSpec((b, class_num), lambda qb, kb: (0, 0)),       # c_i (resident)
            pl.BlockSpec((b, class_num), lambda qb, kb: (0, 0)),       # c_j (resident)
        ],
        out_specs=pl.BlockSpec((1, 8, 128), lambda qb, kb: (qb, 0, 0)),
        scratch_shapes=[pltpu.VMEM((tile, 1), jnp.float32)] * 4,       # m_a, l_a, m_b, l_b
    )

    out = pl.pallas_call(
        kernel,
        out_shape=jax.ShapeDtypeStruct((nqb, 8, 128), jnp.float32),
        grid_spec=grid_spec,
        compiler_params=pltpu.CompilerParams(
            dimension_semantics=("parallel", "arbitrary")),
    )(z_i, z_j, z_i, z_j, c_i, c_j)

    instance_loss = jnp.sum(out[:, 0, 0]) / jnp.float32(2 * b)
    clusterwise_loss = out[0, 0, 1]
    return instance_loss, clusterwise_loss


# --------------------------------------------------------------------------
# Pure-numpy (float64) reference mirroring the PyTorch forward.
# --------------------------------------------------------------------------
def reference_forward_np(z_i, z_j, c_i, c_j, class_num, t_ins, t_clu):
    z_i = np.asarray(z_i, np.float64); z_j = np.asarray(z_j, np.float64)
    c_i = np.asarray(c_i, np.float64); c_j = np.asarray(c_j, np.float64)
    b = z_i.shape[0]; cnum = class_num

    p_i = c_i.sum(0); p_i = p_i / p_i.sum()
    ne_i = math.log(p_i.size) + (p_i * np.log(p_i)).sum()
    p_j = c_j.sum(0); p_j = p_j / p_j.sum()
    ne_j = math.log(p_j.size) + (p_j * np.log(p_j)).sum()
    ne_loss = ne_i + ne_j

    c = np.concatenate([c_i.T, c_j.T], axis=0)            # (2C, B)
    norms = np.linalg.norm(c, axis=1)
    sim = (c @ c.T) / np.maximum(np.outer(norms, norms), 1e-8) / t_clu
    n_clu = 2 * cnum
    pos = np.concatenate([np.diag(sim, cnum), np.diag(sim, -cnum)])
    mask = np.ones((n_clu, n_clu), bool)
    np.fill_diagonal(mask, False)
    for i in range(cnum):
        mask[i, cnum + i] = False
        mask[cnum + i, i] = False
    neg = sim[mask].reshape(n_clu, -1)
    logits = np.concatenate([pos[:, None], neg], axis=1)
    m = logits.max(1, keepdims=True)
    lse = m[:, 0] + np.log(np.exp(logits - m).sum(1))
    cluster_loss = (lse - logits[:, 0]).sum() / n_clu

    feat = np.concatenate([z_i, z_j], axis=0)
    adc = feat @ feat.T / t_ins
    logits2 = adc - adc.max(1, keepdims=True)
    lm = 1.0 - np.eye(2 * b)
    exp_l = np.exp(logits2) * lm
    log_prob = logits2 - np.log(exp_l.sum(1, keepdims=True))
    maskm = np.tile(np.eye(b), (2, 2)) * lm
    mlpp = (maskm * log_prob).sum(1) / maskm.sum(1)
    instance_loss = (-mlpp).mean()
    return instance_loss, cluster_loss + ne_loss


if __name__ == "__main__":
    # small deterministic example shapes: batch=8, feat_dim=32, class_num=10
    batch, feat_dim, class_num = 8, 32, 10
    temperature_ins, temperature_clu = 0.5, 1.0

    key = jax.random.PRNGKey(0)
    k1, k2, k3, k4 = jax.random.split(key, 4)
    z_i = jax.random.normal(k1, (batch, feat_dim), dtype=jnp.float32)
    z_j = jax.random.normal(k2, (batch, feat_dim), dtype=jnp.float32)
    c_i = jax.nn.softmax(jax.random.normal(k3, (batch, class_num)), axis=1)
    c_j = jax.nn.softmax(jax.random.normal(k4, (batch, class_num)), axis=1)

    fwd = jax.jit(functools.partial(
        contrastive_loss_forward,
        class_num=class_num,
        temperature_ins=temperature_ins,
        temperature_clu=temperature_clu))

    inst, clu = fwd(z_i, z_j, c_i, c_j)
    inst = jax.block_until_ready(inst)
    clu = jax.block_until_ready(clu)

    ref_inst, ref_clu = reference_forward_np(
        z_i, z_j, c_i, c_j, class_num, temperature_ins, temperature_clu)

    # Tolerance reflects the (recommended) single-pass bf16 MXU matmuls
    # with f32 accumulation; reference is float64.
    assert np.allclose(float(inst), ref_inst, rtol=3e-2, atol=3e-2), \
        (float(inst), ref_inst)
    assert np.allclose(float(clu), ref_clu, rtol=3e-2, atol=3e-2), \
        (float(clu), ref_clu)

    print("KERNEL_OK")
</pallas_src>

<mosaic_0001>
module attributes {stable_mosaic.version = 11 : i64} {
  func.func @_fused_contrastive_kernel(%arg0: i32, %arg1: i32, %arg2: memref<8x32xf32, #tpu.memory_space<vmem>>, %arg3: memref<8x32xf32, #tpu.memory_space<vmem>>, %arg4: memref<8x32xf32, #tpu.memory_space<vmem>>, %arg5: memref<8x32xf32, #tpu.memory_space<vmem>>, %arg6: memref<8x10xf32, #tpu.memory_space<vmem>>, %arg7: memref<8x10xf32, #tpu.memory_space<vmem>>, %arg8: memref<1x8x128xf32, #tpu.memory_space<vmem>>, %arg9: memref<8x1xf32, #tpu.memory_space<vmem>>, %arg10: memref<8x1xf32, #tpu.memory_space<vmem>>, %arg11: memref<8x1xf32, #tpu.memory_space<vmem>>, %arg12: memref<8x1xf32, #tpu.memory_space<vmem>>) attributes {dimension_semantics = [#tpu.dimension_semantics<parallel>, #tpu.dimension_semantics<arbitrary>], iteration_bounds = array<i64: 1, 1>, scalar_prefetch = 0 : i64, scratch_operands = 4 : i64, tpu.core_type = #tpu.core_type<tc>, window_params = [{transform_indices = @transform_0, window_bounds = array<i64: 8, 32>}, {transform_indices = @transform_1, window_bounds = array<i64: 8, 32>}, {transform_indices = @transform_2, window_bounds = array<i64: 8, 32>}, {transform_indices = @transform_3, window_bounds = array<i64: 8, 32>}, {pipeline_mode = #tpu.pipeline_mode<synchronous>, transform_indices = @transform_4, window_bounds = array<i64: 8, 10>}, {pipeline_mode = #tpu.pipeline_mode<synchronous>, transform_indices = @transform_5, window_bounds = array<i64: 8, 10>}, {transform_indices = @transform_6, window_bounds = array<i64: 1, 8, 128>}]} {
    %c0_i32 = arith.constant 0 : i32
    %0 = arith.cmpi eq, %arg1, %c0_i32 : i32
    %1 = arith.extui %0 : i1 to i32
    %c0_i32_0 = arith.constant 0 : i32
    %2 = arith.cmpi ne, %1, %c0_i32_0 : i32
    scf.if %2 {
      %cst_48 = arith.constant 0xFF800000 : f32
      %89 = vector.broadcast %cst_48 : f32 to vector<8x1xf32>
      %c0_49 = arith.constant 0 : index
      %c0_50 = arith.constant 0 : index
      %90 = vector.load %arg9[%c0_49, %c0_50] : memref<8x1xf32, #tpu.memory_space<vmem>>, vector<8x1xf32>
      tpu.vector_store %arg9[%c0_49, %c0_50], %89 {strides = array<i32>} : memref<8x1xf32, #tpu.memory_space<vmem>>, vector<8x1xf32>,
      %cst_51 = arith.constant 0xFF800000 : f32
      %91 = vector.broadcast %cst_51 : f32 to vector<8x1xf32>
      %c0_52 = arith.constant 0 : index
      %c0_53 = arith.constant 0 : index
      %92 = vector.load %arg11[%c0_52, %c0_53] : memref<8x1xf32, #tpu.memory_space<vmem>>, vector<8x1xf32>
      tpu.vector_store %arg11[%c0_52, %c0_53], %91 {strides = array<i32>} : memref<8x1xf32, #tpu.memory_space<vmem>>, vector<8x1xf32>,
      %cst_54 = arith.constant 0.000000e+00 : f32
      %93 = vector.broadcast %cst_54 : f32 to vector<8x1xf32>
      %c0_55 = arith.constant 0 : index
      %c0_56 = arith.constant 0 : index
      %94 = vector.load %arg10[%c0_55, %c0_56] : memref<8x1xf32, #tpu.memory_space<vmem>>, vector<8x1xf32>
      tpu.vector_store %arg10[%c0_55, %c0_56], %93 {strides = array<i32>} : memref<8x1xf32, #tpu.memory_space<vmem>>, vector<8x1xf32>,
      %cst_57 = arith.constant 0.000000e+00 : f32
      %95 = vector.broadcast %cst_57 : f32 to vector<8x1xf32>
      %c0_58 = arith.constant 0 : index
      %c0_59 = arith.constant 0 : index
      %96 = vector.load %arg12[%c0_58, %c0_59] : memref<8x1xf32, #tpu.memory_space<vmem>>, vector<8x1xf32>
      tpu.vector_store %arg12[%c0_58, %c0_59], %95 {strides = array<i32>} : memref<8x1xf32, #tpu.memory_space<vmem>>, vector<8x1xf32>,
    } else {
    }
    %c0 = arith.constant 0 : index
    %c0_1 = arith.constant 0 : index
    %3 = vector.load %arg2[%c0, %c0_1] : memref<8x32xf32, #tpu.memory_space<vmem>>, vector<8x32xf32>
    %4 = arith.truncf %3 : vector<8x32xf32> to vector<8x32xbf16>
    %c0_2 = arith.constant 0 : index
    %c0_3 = arith.constant 0 : index
    %5 = vector.load %arg3[%c0_2, %c0_3] : memref<8x32xf32, #tpu.memory_space<vmem>>, vector<8x32xf32>
    %6 = arith.truncf %5 : vector<8x32xf32> to vector<8x32xbf16>
    %c0_4 = arith.constant 0 : index
    %c0_5 = arith.constant 0 : index
    %7 = vector.load %arg4[%c0_4, %c0_5] : memref<8x32xf32, #tpu.memory_space<vmem>>, vector<8x32xf32>
    %8 = arith.truncf %7 : vector<8x32xf32> to vector<8x32xbf16>
    %c0_6 = arith.constant 0 : index
    %c0_7 = arith.constant 0 : index
    %9 = vector.load %arg5[%c0_6, %c0_7] : memref<8x32xf32, #tpu.memory_space<vmem>>, vector<8x32xf32>
    %10 = arith.truncf %9 : vector<8x32xf32> to vector<8x32xbf16>
    %cst = arith.constant dense<0.000000e+00> : vector<8x8xf32>
    %11 = tpu.matmul %4, %8, %cst {dimension_numbers = #tpu.dot_dimension_numbers<[1], [1], [0], [0], [0, 0, 1, 0], [], []>} : vector<8x32xbf16>, vector<8x32xbf16>, vector<8x8xf32> -> vector<8x8xf32>
    %cst_8 = arith.constant 2.000000e+00 : f32
    %12 = vector.broadcast %cst_8 : f32 to vector<8x8xf32>
    %13 = arith.mulf %11, %12 : vector<8x8xf32>
    %cst_9 = arith.constant dense<0.000000e+00> : vector<8x8xf32>
    %14 = tpu.matmul %4, %10, %cst_9 {dimension_numbers = #tpu.dot_dimension_numbers<[1], [1], [0], [0], [0, 0, 1, 0], [], []>} : vector<8x32xbf16>, vector<8x32xbf16>, vector<8x8xf32> -> vector<8x8xf32>
    %cst_10 = arith.constant 2.000000e+00 : f32
    %15 = vector.broadcast %cst_10 : f32 to vector<8x8xf32>
    %16 = arith.mulf %14, %15 : vector<8x8xf32>
    %cst_11 = arith.constant dense<0.000000e+00> : vector<8x8xf32>
    %17 = tpu.matmul %6, %8, %cst_11 {dimension_numbers = #tpu.dot_dimension_numbers<[1], [1], [0], [0], [0, 0, 1, 0], [], []>} : vector<8x32xbf16>, vector<8x32xbf16>, vector<8x8xf32> -> vector<8x8xf32>
    %cst_12 = arith.constant 2.000000e+00 : f32
    %18 = vector.broadcast %cst_12 : f32 to vector<8x8xf32>
    %19 = arith.mulf %17, %18 : vector<8x8xf32>
    %cst_13 = arith.constant dense<0.000000e+00> : vector<8x8xf32>
    %20 = tpu.matmul %6, %10, %cst_13 {dimension_numbers = #tpu.dot_dimension_numbers<[1], [1], [0], [0], [0, 0, 1, 0], [], []>} : vector<8x32xbf16>, vector<8x32xbf16>, vector<8x8xf32> -> vector<8x8xf32>
    %cst_14 = arith.constant 2.000000e+00 : f32
    %21 = vector.broadcast %cst_14 : f32 to vector<8x8xf32>
    %22 = arith.mulf %20, %21 : vector<8x8xf32>
    %23 = tpu.iota {dimensions = array<i32: 0>} : vector<8x8xi32>
    %24 = tpu.iota {dimensions = array<i32: 1>} : vector<8x8xi32>
    %25 = arith.cmpi eq, %23, %24 : vector<8x8xi32>
    %26 = arith.cmpi eq, %arg0, %arg1 : i32
    %27 = vector.broadcast %26 : i1 to vector<8x8xi1>
    %28 = arith.andi %25, %27 : vector<8x8xi1>
    %cst_15 = arith.constant 0.000000e+00 : f32
    %cst_16 = arith.constant 1.000000e+00 : f32
    %29 = vector.broadcast %cst_15 : f32 to vector<8x8xf32>
    %30 = vector.broadcast %cst_16 : f32 to vector<8x8xf32>
    %31 = arith.select %28, %29, %30 : vector<8x8xi1>, vector<8x8xf32>
    %cst_17 = arith.constant dense<0xFF800000> : vector<8xf32>
    %32 = vector.multi_reduction <maximumf>, %13, %cst_17 [1] : vector<8x8xf32> to vector<8xf32>
    %33 = vector.shape_cast %32 : vector<8xf32> to vector<8x1xf32>
    %cst_18 = arith.constant dense<0xFF800000> : vector<8xf32>
    %34 = vector.multi_reduction <maximumf>, %16, %cst_18 [1] : vector<8x8xf32> to vector<8xf32>
    %35 = vector.shape_cast %34 : vector<8xf32> to vector<8x1xf32>
    %36 = arith.maximumf %33, %35 : vector<8x1xf32>
    %c0_19 = arith.constant 0 : index
    %c0_20 = arith.constant 0 : index
    %37 = vector.load %arg9[%c0_19, %c0_20] : memref<8x1xf32, #tpu.memory_space<vmem>>, vector<8x1xf32>
    %38 = arith.maximumf %37, %36 : vector<8x1xf32>
    %c0_21 = arith.constant 0 : index
    %c0_22 = arith.constant 0 : index
    %39 = vector.load %arg9[%c0_21, %c0_22] : memref<8x1xf32, #tpu.memory_space<vmem>>, vector<8x1xf32>
    %40 = arith.subf %39, %38 : vector<8x1xf32>
    %41 = math.exp %40 : vector<8x1xf32>
    %42 = vector.broadcast %38 : vector<8x1xf32> to vector<8x8xf32>
    %43 = arith.subf %13, %42 : vector<8x8xf32>
    %44 = math.exp %43 : vector<8x8xf32>
    %45 = arith.mulf %44, %31 : vector<8x8xf32>
    %cst_23 = arith.constant dense<0.000000e+00> : vector<8xf32>
    %46 = vector.multi_reduction <add>, %45, %cst_23 [1] : vector<8x8xf32> to vector<8xf32>
    %47 = vector.shape_cast %46 : vector<8xf32> to vector<8x1xf32>
    %48 = vector.broadcast %38 : vector<8x1xf32> to vector<8x8xf32>
    %49 = arith.subf %16, %48 : vector<8x8xf32>
    %50 = math.exp %49 : vector<8x8xf32>
    %cst_24 = arith.constant dense<0.000000e+00> : vector<8xf32>
    %51 = vector.multi_reduction <add>, %50, %cst_24 [1] : vector<8x8xf32> to vector<8xf32>
    %52 = vector.shape_cast %51 : vector<8xf32> to vector<8x1xf32>
    %53 = arith.addf %47, %52 : vector<8x1xf32>
    %c0_25 = arith.constant 0 : index
    %c0_26 = arith.constant 0 : index
    %54 = vector.load %arg10[%c0_25, %c0_26] : memref<8x1xf32, #tpu.memory_space<vmem>>, vector<8x1xf32>
    %55 = arith.mulf %41, %54 : vector<8x1xf32>
    %56 = arith.addf %55, %53 : vector<8x1xf32>
    %c0_27 = arith.constant 0 : index
    %c0_28 = arith.constant 0 : index
    %57 = vector.load %arg10[%c0_27, %c0_28] : memref<8x1xf32, #tpu.memory_space<vmem>>, vector<8x1xf32>
    tpu.vector_store %arg10[%c0_27, %c0_28], %56 {strides = array<i32>} : memref<8x1xf32, #tpu.memory_space<vmem>>, vector<8x1xf32>,
    %c0_29 = arith.constant 0 : index
    %c0_30 = arith.constant 0 : index
    %58 = vector.load %arg9[%c0_29, %c0_30] : memref<8x1xf32, #tpu.memory_space<vmem>>, vector<8x1xf32>
    tpu.vector_store %arg9[%c0_29, %c0_30], %38 {strides = array<i32>} : memref<8x1xf32, #tpu.memory_space<vmem>>, vector<8x1xf32>,
    %cst_31 = arith.constant dense<0xFF800000> : vector<8xf32>
    %59 = vector.multi_reduction <maximumf>, %19, %cst_31 [1] : vector<8x8xf32> to vector<8xf32>
    %60 = vector.shape_cast %59 : vector<8xf32> to vector<8x1xf32>
    %cst_32 = arith.constant dense<0xFF800000> : vector<8xf32>
    %61 = vector.multi_reduction <maximumf>, %22, %cst_32 [1] : vector<8x8xf32> to vector<8xf32>
    %62 = vector.shape_cast %61 : vector<8xf32> to vector<8x1xf32>
    %63 = arith.maximumf %60, %62 : vector<8x1xf32>
    %c0_33 = arith.constant 0 : index
    %c0_34 = arith.constant 0 : index
    %64 = vector.load %arg11[%c0_33, %c0_34] : memref<8x1xf32, #tpu.memory_space<vmem>>, vector<8x1xf32>
    %65 = arith.maximumf %64, %63 : vector<8x1xf32>
    %c0_35 = arith.constant 0 : index
    %c0_36 = arith.constant 0 : index
    %66 = vector.load %arg11[%c0_35, %c0_36] : memref<8x1xf32, #tpu.memory_space<vmem>>, vector<8x1xf32>
    %67 = arith.subf %66, %65 : vector<8x1xf32>
    %68 = math.exp %67 : vector<8x1xf32>
    %69 = vector.broadcast %65 : vector<8x1xf32> to vector<8x8xf32>
    %70 = arith.subf %19, %69 : vector<8x8xf32>
    %71 = math.exp %70 : vector<8x8xf32>
    %cst_37 = arith.constant dense<0.000000e+00> : vector<8xf32>
    %72 = vector.multi_reduction <add>, %71, %cst_37 [1] : vector<8x8xf32> to vector<8xf32>
    %73 = vector.shape_cast %72 : vector<8xf32> to vector<8x1xf32>
    %74 = vector.broadcast %65 : vector<8x1xf32> to vector<8x8xf32>
    %75 = arith.subf %22, %74 : vector<8x8xf32>
    %76 = math.exp %75 : vector<8x8xf32>
    %77 = arith.mulf %76, %31 : vector<8x8xf32>
    %cst_38 = arith.constant dense<0.000000e+00> : vector<8xf32>
    %78 = vector.multi_reduction <add>, %77, %cst_38 [1] : vector<8x8xf32> to vector<8xf32>
    %79 = vector.shape_cast %78 : vector<8xf32> to vector<8x1xf32>
    %80 = arith.addf %73, %79 : vector<8x1xf32>
    %c0_39 = arith.constant 0 : index
    %c0_40 = arith.constant 0 : index
    %81 = vector.load %arg12[%c0_39, %c0_40] : memref<8x1xf32, #tpu.memory_space<vmem>>, vector<8x1xf32>
    %82 = arith.mulf %68, %81 : vector<8x1xf32>
    %83 = arith.addf %82, %80 : vector<8x1xf32>
    %c0_41 = arith.constant 0 : index
    %c0_42 = arith.constant 0 : index
    %84 = vector.load %arg12[%c0_41, %c0_42] : memref<8x1xf32, #tpu.memory_space<vmem>>, vector<8x1xf32>
    tpu.vector_store %arg12[%c0_41, %c0_42], %83 {strides = array<i32>} : memref<8x1xf32, #tpu.memory_space<vmem>>, vector<8x1xf32>,
    %c0_43 = arith.constant 0 : index
    %c0_44 = arith.constant 0 : index
    %85 = vector.load %arg11[%c0_43, %c0_44] : memref<8x1xf32, #tpu.memory_space<vmem>>, vector<8x1xf32>
    tpu.vector_store %arg11[%c0_43, %c0_44], %65 {strides = array<i32>} : memref<8x1xf32, #tpu.memory_space<vmem>>, vector<8x1xf32>,
    %c0_i32_45 = arith.constant 0 : i32
    %86 = arith.cmpi eq, %arg1, %c0_i32_45 : i32
    %87 = arith.extui %86 : i1 to i32
    %cst_46 = arith.constant 2.000000e+00 : f32
    %c0_i32_47 = arith.constant 0 : i32
    %88 = arith.cmpi ne, %87, %c0_i32_47 : i32
    scf.if %88 {
      %c0_48 = arith.constant 0 : index
      %c0_49 = arith.constant 0 : index
      %89 = vector.load %arg2[%c0_48, %c0_49] : memref<8x32xf32, #tpu.memory_space<vmem>>, vector<8x32xf32>
      %c0_50 = arith.constant 0 : index
      %c0_51 = arith.constant 0 : index
      %90 = vector.load %arg3[%c0_50, %c0_51] : memref<8x32xf32, #tpu.memory_space<vmem>>, vector<8x32xf32>
      %91 = arith.mulf %89, %90 : vector<8x32xf32>
      %92 = vector.shape_cast %91 : vector<8x32xf32> to vector<1x8x32xf32>
      %cst_52 = arith.constant dense<0.000000e+00> : vector<1xf32>
      %93 = vector.multi_reduction <add>, %92, %cst_52 [1, 2] : vector<1x8x32xf32> to vector<1xf32>
      %94 = vector.shape_cast %93 : vector<1xf32> to vector<1x1x1xf32>
      %95 = vector.extract %94[0, 0, 0] : f32 from vector<1x1x1xf32>
      %96 = arith.mulf %95, %cst_46 : f32
      %c0_53 = arith.constant 0 : index
      %c0_54 = arith.constant 0 : index
      %97 = vector.load %arg9[%c0_53, %c0_54] : memref<8x1xf32, #tpu.memory_space<vmem>>, vector<8x1xf32>
      %c0_55 = arith.constant 0 : index
      %c0_56 = arith.constant 0 : index
      %98 = vector.load %arg10[%c0_55, %c0_56] : memref<8x1xf32, #tpu.memory_space<vmem>>, vector<8x1xf32>
      %99 = math.log %98 : vector<8x1xf32>
      %100 = arith.addf %97, %99 : vector<8x1xf32>
      %101 = vector.shape_cast %100 : vector<8x1xf32> to vector<1x8x1xf32>
      %cst_57 = arith.constant dense<0.000000e+00> : vector<1xf32>
      %102 = vector.multi_reduction <add>, %101, %cst_57 [1, 2] : vector<1x8x1xf32> to vector<1xf32>
      %103 = vector.shape_cast %102 : vector<1xf32> to vector<1x1x1xf32>
      %104 = vector.extract %103[0, 0, 0] : f32 from vector<1x1x1xf32>
      %c0_58 = arith.constant 0 : index
      %c0_59 = arith.constant 0 : index
      %105 = vector.load %arg11[%c0_58, %c0_59] : memref<8x1xf32, #tpu.memory_space<vmem>>, vector<8x1xf32>
      %c0_60 = arith.constant 0 : index
      %c0_61 = arith.constant 0 : index
      %106 = vector.load %arg12[%c0_60, %c0_61] : memref<8x1xf32, #tpu.memory_space<vmem>>, vector<8x1xf32>
      %107 = math.log %106 : vector<8x1xf32>
      %108 = arith.addf %105, %107 : vector<8x1xf32>
      %109 = vector.shape_cast %108 : vector<8x1xf32> to vector<1x8x1xf32>
      %cst_62 = arith.constant dense<0.000000e+00> : vector<1xf32>
      %110 = vector.multi_reduction <add>, %109, %cst_62 [1, 2] : vector<1x8x1xf32> to vector<1xf32>
      %111 = vector.shape_cast %110 : vector<1xf32> to vector<1x1x1xf32>
      %112 = vector.extract %111[0, 0, 0] : f32 from vector<1x1x1xf32>
      %113 = arith.addf %104, %112 : f32
      %cst_63 = arith.constant 2.000000e+00 : f32
      %114 = arith.mulf %cst_63, %96 : f32
      %115 = arith.subf %113, %114 : f32
      %c0_i32_64 = arith.constant 0 : i32
      %116 = arith.cmpi eq, %arg0, %c0_i32_64 : i32
      %c0_65 = arith.constant 0 : index
      %c0_66 = arith.constant 0 : index
      %117 = vector.load %arg6[%c0_65, %c0_66] : memref<8x10xf32, #tpu.memory_space<vmem>>, vector<8x10xf32>
      %c0_67 = arith.constant 0 : index
      %c0_68 = arith.constant 0 : index
      %118 = vector.load %arg7[%c0_67, %c0_68] : memref<8x10xf32, #tpu.memory_space<vmem>>, vector<8x10xf32>
      %cst_69 = arith.constant dense<0.000000e+00> : vector<10xf32>
      %119 = vector.multi_reduction <add>, %117, %cst_69 [0] : vector<8x10xf32> to vector<10xf32>
      %120 = vector.shape_cast %119 : vector<10xf32> to vector<1x10xf32>
      %121 = vector.shape_cast %120 : vector<1x10xf32> to vector<1x1x10xf32>
      %cst_70 = arith.constant dense<0.000000e+00> : vector<1xf32>
      %122 = vector.multi_reduction <add>, %121, %cst_70 [1, 2] : vector<1x1x10xf32> to vector<1xf32>
      %123 = vector.shape_cast %122 : vector<1xf32> to vector<1x1x1xf32>
      %124 = vector.extract %123[0, 0, 0] : f32 from vector<1x1x1xf32>
      %125 = vector.broadcast %124 : f32 to vector<1x10xf32>
      %126 = arith.divf %120, %125 : vector<1x10xf32>
      %cst_71 = arith.constant 9.99999996E-13 : f32
      %127 = vector.broadcast %cst_71 : f32 to vector<1x10xf32>
      %128 = arith.maximumf %126, %127 : vector<1x10xf32>
      %129 = math.log %128 : vector<1x10xf32>
      %130 = arith.mulf %128, %129 : vector<1x10xf32>
      %131 = vector.shape_cast %130 : vector<1x10xf32> to vector<1x1x10xf32>
      %cst_72 = arith.constant dense<0.000000e+00> : vector<1xf32>
      %132 = vector.multi_reduction <add>, %131, %cst_72 [1, 2] : vector<1x1x10xf32> to vector<1xf32>
      %133 = vector.shape_cast %132 : vector<1xf32> to vector<1x1x1xf32>
      %134 = vector.extract %133[0, 0, 0] : f32 from vector<1x1x1xf32>
      %cst_73 = arith.constant 2.30258512 : f32
      %135 = arith.addf %cst_73, %134 : f32
      %cst_74 = arith.constant dense<0.000000e+00> : vector<10xf32>
      %136 = vector.multi_reduction <add>, %118, %cst_74 [0] : vector<8x10xf32> to vector<10xf32>
      %137 = vector.shape_cast %136 : vector<10xf32> to vector<1x10xf32>
      %138 = vector.shape_cast %137 : vector<1x10xf32> to vector<1x1x10xf32>
      %cst_75 = arith.constant dense<0.000000e+00> : vector<1xf32>
      %139 = vector.multi_reduction <add>, %138, %cst_75 [1, 2] : vector<1x1x10xf32> to vector<1xf32>
      %140 = vector.shape_cast %139 : vector<1xf32> to vector<1x1x1xf32>
      %141 = vector.extract %140[0, 0, 0] : f32 from vector<1x1x1xf32>
      %142 = vector.broadcast %141 : f32 to vector<1x10xf32>
      %143 = arith.divf %137, %142 : vector<1x10xf32>
      %cst_76 = arith.constant 9.99999996E-13 : f32
      %144 = vector.broadcast %cst_76 : f32 to vector<1x10xf32>
      %145 = arith.maximumf %143, %144 : vector<1x10xf32>
      %146 = math.log %145 : vector<1x10xf32>
      %147 = arith.mulf %145, %146 : vector<1x10xf32>
      %148 = vector.shape_cast %147 : vector<1x10xf32> to vector<1x1x10xf32>
      %cst_77 = arith.constant dense<0.000000e+00> : vector<1xf32>
      %149 = vector.multi_reduction <add>, %148, %cst_77 [1, 2] : vector<1x1x10xf32> to vector<1xf32>
      %150 = vector.shape_cast %149 : vector<1xf32> to vector<1x1x1xf32>
      %151 = vector.extract %150[0, 0, 0] : f32 from vector<1x1x1xf32>
      %cst_78 = arith.constant 2.30258512 : f32
      %152 = arith.addf %cst_78, %151 : f32
      %153 = arith.mulf %117, %117 : vector<8x10xf32>
      %cst_79 = arith.constant dense<0.000000e+00> : vector<10xf32>
      %154 = vector.multi_reduction <add>, %153, %cst_79 [0] : vector<8x10xf32> to vector<10xf32>
      %155 = vector.shape_cast %154 : vector<10xf32> to vector<1x10xf32>
      %cst_80 = arith.constant 1.000000e-16 : f32
      %156 = vector.broadcast %cst_80 : f32 to vector<1x10xf32>
      %157 = arith.maximumf %155, %156 : vector<1x10xf32>
      %158 = math.rsqrt %157 : vector<1x10xf32>
      %159 = arith.mulf %118, %118 : vector<8x10xf32>
      %cst_81 = arith.constant dense<0.000000e+00> : vector<10xf32>
      %160 = vector.multi_reduction <add>, %159, %cst_81 [0] : vector<8x10xf32> to vector<10xf32>
      %161 = vector.shape_cast %160 : vector<10xf32> to vector<1x10xf32>
      %cst_82 = arith.constant 1.000000e-16 : f32
      %162 = vector.broadcast %cst_82 : f32 to vector<1x10xf32>
      %163 = arith.maximumf %161, %162 : vector<1x10xf32>
      %164 = math.rsqrt %163 : vector<1x10xf32>
      %165 = vector.broadcast %158 : vector<1x10xf32> to vector<8x10xf32>
      %166 = arith.mulf %117, %165 : vector<8x10xf32>
      %167 = vector.broadcast %164 : vector<1x10xf32> to vector<8x10xf32>
      %168 = arith.mulf %118, %167 : vector<8x10xf32>
      %cst_83 = arith.constant dense<0.000000e+00> : vector<10x10xf32>
      %169 = tpu.matmul %166, %166, %cst_83 {dimension_numbers = #tpu.dot_dimension_numbers<[0], [0], [1], [1], [0, 1, 1, 1], [], []>} : vector<8x10xf32>, vector<8x10xf32>, vector<10x10xf32> -> vector<10x10xf32>
      %cst_84 = arith.constant 1.000000e+00 : f32
      %170 = vector.broadcast %cst_84 : f32 to vector<10x10xf32>
      %171 = arith.mulf %169, %170 : vector<10x10xf32>
      %cst_85 = arith.constant dense<0.000000e+00> : vector<10x10xf32>
      %172 = tpu.matmul %166, %168, %cst_85 {dimension_numbers = #tpu.dot_dimension_numbers<[0], [0], [1], [1], [0, 1, 1, 1], [], []>} : vector<8x10xf32>, vector<8x10xf32>, vector<10x10xf32> -> vector<10x10xf32>
      %cst_86 = arith.constant 1.000000e+00 : f32
      %173 = vector.broadcast %cst_86 : f32 to vector<10x10xf32>
      %174 = arith.mulf %172, %173 : vector<10x10xf32>
      %cst_87 = arith.constant dense<0.000000e+00> : vector<10x10xf32>
      %175 = tpu.matmul %168, %166, %cst_87 {dimension_numbers = #tpu.dot_dimension_numbers<[0], [0], [1], [1], [0, 1, 1, 1], [], []>} : vector<8x10xf32>, vector<8x10xf32>, vector<10x10xf32> -> vector<10x10xf32>
      %cst_88 = arith.constant 1.000000e+00 : f32
      %176 = vector.broadcast %cst_88 : f32 to vector<10x10xf32>
      %177 = arith.mulf %175, %176 : vector<10x10xf32>
      %cst_89 = arith.constant dense<0.000000e+00> : vector<10x10xf32>
      %178 = tpu.matmul %168, %168, %cst_89 {dimension_numbers = #tpu.dot_dimension_numbers<[0], [0], [1], [1], [0, 1, 1, 1], [], []>} : vector<8x10xf32>, vector<8x10xf32>, vector<10x10xf32> -> vector<10x10xf32>
      %cst_90 = arith.constant 1.000000e+00 : f32
      %179 = vector.broadcast %cst_90 : f32 to vector<10x10xf32>
      %180 = arith.mulf %178, %179 : vector<10x10xf32>
      %181 = tpu.iota {dimensions = array<i32: 0>} : vector<10x10xi32>
      %182 = tpu.iota {dimensions = array<i32: 1>} : vector<10x10xi32>
      %183 = arith.cmpi eq, %181, %182 : vector<10x10xi32>
      %cst_91 = arith.constant -1.000000e+30 : f32
      %184 = vector.broadcast %cst_91 : f32 to vector<10x10xf32>
      %185 = arith.select %183, %184, %171 : vector<10x10xi1>, vector<10x10xf32>
      %186 = arith.cmpi eq, %181, %182 : vector<10x10xi32>
      %cst_92 = arith.constant -1.000000e+30 : f32
      %187 = vector.broadcast %cst_92 : f32 to vector<10x10xf32>
      %188 = arith.select %186, %187, %180 : vector<10x10xi1>, vector<10x10xf32>
      %cst_93 = arith.constant dense<0xFF800000> : vector<10xf32>
      %189 = vector.multi_reduction <maximumf>, %185, %cst_93 [1] : vector<10x10xf32> to vector<10xf32>
      %190 = vector.shape_cast %189 : vector<10xf32> to vector<10x1xf32>
      %cst_94 = arith.constant dense<0xFF800000> : vector<10xf32>
      %191 = vector.multi_reduction <maximumf>, %174, %cst_94 [1] : vector<10x10xf32> to vector<10xf32>
      %192 = vector.shape_cast %191 : vector<10xf32> to vector<10x1xf32>
      %193 = arith.maximumf %190, %192 : vector<10x1xf32>
      %194 = vector.broadcast %193 : vector<10x1xf32> to vector<10x10xf32>
      %195 = arith.subf %185, %194 : vector<10x10xf32>
      %196 = math.exp %195 : vector<10x10xf32>
      %cst_95 = arith.constant dense<0.000000e+00> : vector<10xf32>
      %197 = vector.multi_reduction <add>, %196, %cst_95 [1] : vector<10x10xf32> to vector<10xf32>
      %198 = vector.shape_cast %197 : vector<10xf32> to vector<10x1xf32>
      %199 = vector.broadcast %193 : vector<10x1xf32> to vector<10x10xf32>
      %200 = arith.subf %174, %199 : vector<10x10xf32>
      %201 = math.exp %200 : vector<10x10xf32>
      %cst_96 = arith.constant dense<0.000000e+00> : vector<10xf32>
      %202 = vector.multi_reduction <add>, %201, %cst_96 [1] : vector<10x10xf32> to vector<10xf32>
      %203 = vector.shape_cast %202 : vector<10xf32> to vector<10x1xf32>
      %204 = arith.addf %198, %203 : vector<10x1xf32>
      %205 = math.log %204 : vector<10x1xf32>
      %206 = arith.addf %193, %205 : vector<10x1xf32>
      %cst_97 = arith.constant dense<0xFF800000> : vector<10xf32>
      %207 = vector.multi_reduction <maximumf>, %188, %cst_97 [1] : vector<10x10xf32> to vector<10xf32>
      %208 = vector.shape_cast %207 : vector<10xf32> to vector<10x1xf32>
      %cst_98 = arith.constant dense<0xFF800000> : vector<10xf32>
      %209 = vector.multi_reduction <maximumf>, %177, %cst_98 [1] : vector<10x10xf32> to vector<10xf32>
      %210 = vector.shape_cast %209 : vector<10xf32> to vector<10x1xf32>
      %211 = arith.maximumf %208, %210 : vector<10x1xf32>
      %212 = vector.broadcast %211 : vector<10x1xf32> to vector<10x10xf32>
      %213 = arith.subf %188, %212 : vector<10x10xf32>
      %214 = math.exp %213 : vector<10x10xf32>
      %cst_99 = arith.constant dense<0.000000e+00> : vector<10xf32>
      %215 = vector.multi_reduction <add>, %214, %cst_99 [1] : vector<10x10xf32> to vector<10xf32>
      %216 = vector.shape_cast %215 : vector<10xf32> to vector<10x1xf32>
      %217 = vector.broadcast %211 : vector<10x1xf32> to vector<10x10xf32>
      %218 = arith.subf %177, %217 : vector<10x10xf32>
      %219 = math.exp %218 : vector<10x10xf32>
      %cst_100 = arith.constant dense<0.000000e+00> : vector<10xf32>
      %220 = vector.multi_reduction <add>, %219, %cst_100 [1] : vector<10x10xf32> to vector<10xf32>
      %221 = vector.shape_cast %220 : vector<10xf32> to vector<10x1xf32>
      %222 = arith.addf %216, %221 : vector<10x1xf32>
      %223 = math.log %222 : vector<10x1xf32>
      %224 = arith.addf %211, %223 : vector<10x1xf32>
      %225 = arith.mulf %166, %168 : vector<8x10xf32>
      %cst_101 = arith.constant dense<0.000000e+00> : vector<10xf32>
      %226 = vector.multi_reduction <add>, %225, %cst_101 [0] : vector<8x10xf32> to vector<10xf32>
      %227 = vector.shape_cast %226 : vector<10xf32> to vector<1x10xf32>
      %cst_102 = arith.constant 1.000000e+00 : f32
      %228 = vector.broadcast %cst_102 : f32 to vector<1x10xf32>
      %229 = arith.mulf %227, %228 : vector<1x10xf32>
      %230 = vector.shape_cast %206 : vector<10x1xf32> to vector<1x10x1xf32>
      %cst_103 = arith.constant dense<0.000000e+00> : vector<1xf32>
      %231 = vector.multi_reduction <add>, %230, %cst_103 [1, 2] : vector<1x10x1xf32> to vector<1xf32>
      %232 = vector.shape_cast %231 : vector<1xf32> to vector<1x1x1xf32>
      %233 = vector.extract %232[0, 0, 0] : f32 from vector<1x1x1xf32>
      %234 = vector.shape_cast %224 : vector<10x1xf32> to vector<1x10x1xf32>
      %cst_104 = arith.constant dense<0.000000e+00> : vector<1xf32>
      %235 = vector.multi_reduction <add>, %234, %cst_104 [1, 2] : vector<1x10x1xf32> to vector<1xf32>
      %236 = vector.shape_cast %235 : vector<1xf32> to vector<1x1x1xf32>
      %237 = vector.extract %236[0, 0, 0] : f32 from vector<1x1x1xf32>
      %238 = arith.addf %233, %237 : f32
      %239 = vector.shape_cast %229 : vector<1x10xf32> to vector<1x1x10xf32>
      %cst_105 = arith.constant dense<0.000000e+00> : vector<1xf32>
      %240 = vector.multi_reduction <add>, %239, %cst_105 [1, 2] : vector<1x1x10xf32> to vector<1xf32>
      %241 = vector.shape_cast %240 : vector<1xf32> to vector<1x1x1xf32>
      %242 = vector.extract %241[0, 0, 0] : f32 from vector<1x1x1xf32>
      %cst_106 = arith.constant 2.000000e+00 : f32
      %243 = arith.mulf %cst_106, %242 : f32
      %244 = arith.subf %238, %243 : f32
      %cst_107 = arith.constant 2.000000e+01 : f32
      %245 = arith.divf %244, %cst_107 : f32
      %246 = arith.addf %245, %135 : f32
      %247 = arith.addf %246, %152 : f32
      %cst_108 = arith.constant 0.000000e+00 : f32
      %248 = arith.select %116, %247, %cst_108 : f32
      %249 = tpu.iota {dimensions = array<i32: 2>} : vector<1x8x128xi32>
      %c0_i32_109 = arith.constant 0 : i32
      %250 = vector.broadcast %c0_i32_109 : i32 to vector<1x8x128xi32>
      %251 = arith.cmpi eq, %249, %250 : vector<1x8x128xi32>
      %c1_i32 = arith.constant 1 : i32
      %252 = vector.broadcast %c1_i32 : i32 to vector<1x8x128xi32>
      %253 = arith.cmpi eq, %249, %252 : vector<1x8x128xi32>
      %cst_110 = arith.constant 0.000000e+00 : f32
      %254 = vector.broadcast %248 : f32 to vector<1x8x128xf32>
      %255 = vector.broadcast %cst_110 : f32 to vector<1x8x128xf32>
      %256 = arith.select %253, %254, %255 : vector<1x8x128xi1>, vector<1x8x128xf32>
      %257 = vector.broadcast %115 : f32 to vector<1x8x128xf32>
      %258 = arith.select %251, %257, %256 : vector<1x8x128xi1>, vector<1x8x128xf32>
      %c0_111 = arith.constant 0 : index
      %c0_112 = arith.constant 0 : index
      %c0_113 = arith.constant 0 : index
      %259 = vector.load %arg8[%c0_111, %c0_112, %c0_113] : memref<1x8x128xf32, #tpu.memory_space<vmem>>, vector<1x8x128xf32>
      tpu.vector_store %arg8[%c0_111, %c0_112, %c0_113], %258 {strides = array<i32>} : memref<1x8x128xf32, #tpu.memory_space<vmem>>, vector<1x8x128xf32>,
    } else {
    }
    return
  }
  func.func @transform_0(%arg0: i32, %arg1: i32) -> (i32, i32) {
    %c0_i32 = arith.constant 0 : i32
    %c0_i32_0 = arith.constant 0 : i32
    return %arg0, %c0_i32 : i32, i32
  }
  func.func @transform_1(%arg0: i32, %arg1: i32) -> (i32, i32) {
    %c0_i32 = arith.constant 0 : i32
    %c0_i32_0 = arith.constant 0 : i32
    return %arg0, %c0_i32 : i32, i32
  }
  func.func @transform_2(%arg0: i32, %arg1: i32) -> (i32, i32) {
    %c0_i32 = arith.constant 0 : i32
    %c0_i32_0 = arith.constant 0 : i32
    return %arg1, %c0_i32 : i32, i32
  }
  func.func @transform_3(%arg0: i32, %arg1: i32) -> (i32, i32) {
    %c0_i32 = arith.constant 0 : i32
    %c0_i32_0 = arith.constant 0 : i32
    return %arg1, %c0_i32 : i32, i32
  }
  func.func @transform_4(%arg0: i32, %arg1: i32) -> (i32, i32) {
    %c0_i32 = arith.constant 0 : i32
    %c0_i32_0 = arith.constant 0 : i32
    %c0_i32_1 = arith.constant 0 : i32
    return %c0_i32, %c0_i32_0 : i32, i32
  }
  func.func @transform_5(%arg0: i32, %arg1: i32) -> (i32, i32) {
    %c0_i32 = arith.constant 0 : i32
    %c0_i32_0 = arith.constant 0 : i32
    %c0_i32_1 = arith.constant 0 : i32
    return %c0_i32, %c0_i32_0 : i32, i32
  }
  func.func @transform_6(%arg0: i32, %arg1: i32) -> (i32, i32, i32) {
    %c0_i32 = arith.constant 0 : i32
    %c0_i32_0 = arith.constant 0 : i32
    %c0_i32_1 = arith.constant 0 : i32
    return %arg0, %c0_i32, %c0_i32_0 : i32, i32, i32
  }
}

</mosaic_0001>

<bundles_post_ra>
// kernel: contrastive_loss_forward.1
= control target key start
LH: loop header
LB: loop body
LE: loop exit
PB: predicated region body
PF: predicated region fallthrough
CT: control target
= control target key end

     0   :  { %11 = vsyncpa [#allocation7], 0  ;;  %s1313_s0 = inlined_call_operand.hbm [shape: f32[8,32], index: 0, kind: input, shape index: {}, may-alias: {0,2}]   ;;  %s1314_s1 = inlined_call_operand.hbm [shape: f32[8,32], index: 1, kind: input, shape index: {}, may-alias: {1,3}]   ;;  %s1315_s2 = inlined_call_operand.hbm [shape: f32[8,32], index: 2, kind: input, shape index: {}, may-alias: {0,2}]   ;;  %s1316_s3 = inlined_call_operand.hbm [shape: f32[8,32], index: 3, kind: input, shape index: {}, may-alias: {1,3}]   ;;  %s1317_s4 = inlined_call_operand.hbm [shape: f32[8,10], index: 4, kind: input, shape index: {}]   ;;  %s1318_s5 = inlined_call_operand.hbm [shape: f32[8,10], index: 5, kind: input, shape index: {}]   ;;  %s1319_s6 = inlined_call_operand.vmem [shape: f32[1,8,128], index: 6, kind: output, shape index: {}]  }
   0x1   :  { %12 = vsyncpa [#allocation9], 0 }
   0x2   :  { %13 = vsyncpa [#allocation12], 0  ;;  %s31_s23 = sshll.u32 %s1314_s1, 4  ;;  %s32_s23 = int_to_ptr.hbm [resolvable:$true] %s31_s23 }
   0x3   :  { %14 = vsyncpa [#allocation15], 0  ;;  %s1061_s24 = smov [#allocation8]   ;;  %s53_s28 = sshll.u32 %s1316_s3, 4  ;;  %s54_s28 = int_to_ptr.hbm [resolvable:$true] %s53_s28 }
   0x4   :  { %s33_s25 = sshll.u32 %s1061_s24, 4  ;;  %s1062_s29 = smov [#allocation11]   ;;  %s34_s25 = int_to_ptr.vmem [resolvable:$true] %s33_s25 }
   0x5   :  { %36 = dma.hbm_to_vmem [thread:$0]  %s32_s23, 128, %s34_s25, [#allocation9]  }
   0x6   :  { %s55_s30 = sshll.u32 %s1062_s29, 4  ;;  %s20_s9 = sshll.u32 %s1313_s0, 4  ;;  %s56_s30 = int_to_ptr.vmem [resolvable:$true] %s55_s30  ;;  %s21_s9 = int_to_ptr.hbm [resolvable:$true] %s20_s9 }
   0x7   :  { %58 = dma.hbm_to_vmem [thread:$0]  %s54_s28, 128, %s56_s30, [#allocation12]  }
   0x8   :  { %s42_s11 = sshll.u32 %s1315_s2, 4  ;;  %s1063_s12 = smov [#allocation6]   ;;  %s43_s11 = int_to_ptr.hbm [resolvable:$true] %s42_s11 }
   0x9   :  { %s22_s13 = sshll.u32 %s1063_s12, 4  ;;  %s1064_s3 = smov [#allocation10]   ;;  %s23_s13 = int_to_ptr.vmem [resolvable:$true] %s22_s13 }
   0xa   :  { %25 = dma.hbm_to_vmem [thread:$0]  %s21_s9, 128, %s23_s13, [#allocation7]  }
   0xb   :  { %s44_s14 = sshll.u32 %s1064_s3, 4  ;;  %s64_s17 = sshll.u32 %s1317_s4, 4  ;;  %s45_s14 = int_to_ptr.vmem [resolvable:$true] %s44_s14  ;;  %s65_s17 = int_to_ptr.hbm [resolvable:$true] %s64_s17 }
   0xc   :  { %47 = dma.hbm_to_vmem [thread:$0]  %s43_s11, 128, %s45_s14, [#allocation9]  }
   0xd   :  { %s75_s19 = sshll.u32 %s1318_s5, 4  ;;  %s1065_s20 = smov [#allocation13]   ;;  %s76_s19 = int_to_ptr.hbm [resolvable:$true] %s75_s19 }
   0xe   :  { %s66_s2 = sshll.u32 %s1065_s20, 4  ;;  %s1066_s21 = smov [#allocation14]   ;;  %s67_s2 = int_to_ptr.vmem [resolvable:$true] %s66_s2 }
   0xf   :  { %69 = dma.hbm_to_vmem [thread:$0]  %s65_s17, 128, %s67_s2, [#allocation12]  }
  0x10   :  { %s77_s22 = sshll.u32 %s1066_s21, 4  ;;  %s78_s22 = int_to_ptr.vmem [resolvable:$true] %s77_s22 }
  0x11   :  { %80 = dma.hbm_to_vmem [thread:$0]  %s76_s19, 128, %s78_s22, [#allocation15]  }
  0x12   :  { %1053 = dma.done.wait [#allocation7], 128  }
  0x13   :  { %1054 = vsyncadd [#allocation7], 4294967168 }
  0x14   :  { %1055 = dma.done.wait [#allocation9], 256  }
  0x15   :  { %1056 = vsyncadd [#allocation9], 4294967040 }
  0x16   :  { %1057 = dma.done.wait [#allocation12], 256  }
  0x17   :  { %1058 = vsyncadd [#allocation12], 4294967040 }
  0x18   :  { %1059 = dma.done.wait [#allocation15], 128  }
  0x19   :  { %1060 = vsyncadd [#allocation15], 4294967168  ;;  %v119_v0 = vld [vmem:[#allocation10] sm:$0xff]  ;;  %vm123_vm0 = vcmask 261120   ;;  %v121_v1 = vld [vmem:[#allocation11] sm:$0xff]  ;;  %vm203_vm1 = vcmask 64512   ;;  %v192_v41 = vlaneseq }
  0x1a   :  { %v120_v2 = vpack.c.bf16 %v119_v0, %v119_v0  ;;  %v122_v3 = vpack.c.bf16 %v121_v1, %v121_v1  ;;  %v1127_v6 = vld [vmem:[#allocation6] sm:$0xff]  ;;  %v1129_v7 = vld [vmem:[#allocation8] sm:$0xff]  ;;  %vm110_vm2 = vcmask 7168   ;;  %v1067_v26 = vmov -inf  }
  0x1b   :  { %v116_v8 = vpack.c.bf16 %v1127_v6, %v1127_v6  ;;  %v118_v9 = vpack.c.bf16 %v1129_v7, %v1129_v7  ;;  %111 = vst.msk [vmem:[#allocation2] sm:$0xff] %vm110_vm2, %v1067_v26  ;;  %v1068_v27 = vmov 0   ;;  %v1069_v28 = vmov 0.0  }
  0x1c   :  { %v128_v4 = vsel %vm123_vm0, %v120_v2, 0  ;;  %v145_v5 = vsel %vm123_vm0, %v122_v3, 0  ;;  %112 = vst.msk [vmem:[#allocation4] sm:$0xff] %vm110_vm2, %v1067_v26  ;;  %853 = vset.pattern.permute.xlu2 %v1068_v27  ;;  %v1159_v45 = vshrl.u32 %v192_v41, 7  ;;  %v1161_v46 = vand.u32 127, %v192_v41  ;;  %v1172_v2 = vld [vmem:[#allocation13] sm:$0xff] }
  0x1d   :  { %137 = vmatpush.bf16.xpose.msra.mxu0 %v128_v4  ;;  %154 = vmatpush.bf16.xpose.msra.mxu1 %v145_v5  ;;  %113 = vst.msk [vmem:[#allocation3] sm:$0xff] %vm110_vm2, %v1069_v28  ;;  %v1070_v52 = vmov 1.0   ;;  %vm330_vm4 = vcmask 80896   ;;  %vm338_vm5 = vcmask 73728   ;;  %vm645_vm14 = vcmask 74752  }
  0x1e   :  { %171 = vmatpush.bf16.xpose.msra.mxu2 %v128_v4  ;;  %185 = vmatpush.bf16.xpose.msra.mxu3 %v145_v5  ;;  %114 = vst.msk [vmem:[#allocation5] sm:$0xff] %vm110_vm2, %v1069_v28  ;;  %vm196_vm3 = vcmp.eq.s32.totalorder %v1159_v45, %v1161_v46  ;;  %v331_v3 = vsel %vm330_vm4, %v1172_v2, 0.0 }
  0x1f   :  { %v202_v53 = vsel %vm196_vm3, 0.0, %v1070_v52  ;;  %v332_v4 = vrot.slane %v331_v3, 4  ;;  %v1188_v52 = vld [vmem:[#allocation14] sm:$0xff] }
  0x21   :  { %v333_v5 = vadd.f32 %v332_v4, %v331_v3 }
  0x22   :  { %v1148_v32 = vld [vmem:[#allocation2] sm:$0xff] }
  0x23   :  { %v248_v37 = vld [vmem:[#allocation4] sm:$0xff] }
  0x24   :  { %808 = vmatmul.msk.bf16.vlgmr.msra.gmra.mxu0 %vm123_vm0, %v116_v8  ;;  %809 = vmatmul.msk.bf16.vlgmr.msra.gmra.mxu1 %vm123_vm0, %v116_v8  ;;  %v334_v8 = vrot.slane %v333_v5, 2 }
  0x25   :  { %810 = vmatmul.msk.bf16.vlgmr.msra.gmra.mxu2 %vm123_vm0, %v118_v9  ;;  %811 = vmatmul.msk.bf16.vlgmr.msra.gmra.mxu3 %vm123_vm0, %v118_v9 }
  0x26   :  { %v335_v9 = vadd.f32 %v334_v8, %v333_v5 }
  0xa1   :  { %v139_v10 = vpop.f32.mrf.mxu0  ;;  %v156_v11 = vpop.f32.mrf.mxu1 }
  0xa2   :  { %v143_v12 = vmul.f32 2.0, %v139_v10  ;;  %v160_v14 = vmul.f32 2.0, %v156_v11  ;;  %v336_v10 = vrot.slane %v335_v9, 1  ;;  %v428_v11 = vmul.f32 %v1172_v2, %v1172_v2 }
  0xa4   :  { %v204_v13 = vsel %vm203_vm1, %v143_v12, -inf  ;;  %v207_v20 = vsel %vm203_vm1, %v160_v14, -inf }
  0xa5   :  { %205 = vmax.xlane.f32.xlu0 %v204_v13  ;;  %v1180_v13 = vadd.f32 %v336_v10, %v335_v9 }
  0xa8   :  { %v173_v15 = vpop.f32.mrf.mxu2  ;;  %v187_v16 = vpop.f32.mrf.mxu3 }
  0xa9   :  { %v177_v17 = vmul.f32 2.0, %v173_v15  ;;  %v141_v18 = vpop.f32.mrf.mxu0  ;;  %v158_v19 = vpop.f32.mrf.mxu1  ;;  %v191_v22 = vmul.f32 2.0, %v187_v16  ;;  %v339_v16 = vsel %vm338_vm5, %v1180_v13, 0.0 }
  0xab   :  { %v241_v21 = vsel %vm203_vm1, %v177_v17, -inf  ;;  %v244_v25 = vsel %vm203_vm1, %v191_v22, -inf }
  0xac   :  { %242 = vmax.xlane.f32.xlu1 %v241_v21 }
  0xad   :  { %208 = vmax.xlane.f32.xlu0 %v207_v20 }
  0xb0   :  { %v175_v23 = vpop.f32.mrf.mxu2  ;;  %v189_v24 = vpop.f32.mrf.mxu3 }
  0xb1   :  { %v235_v23 = vld [vmem:[#allocation3] sm:$0xff] }
  0xb4   :  { %245 = vmax.xlane.f32.xlu1 %v244_v25 }
 0x118   :  { %v206_v29 = vpop.xlane.xlu0 %205 }
 0x11f   :  { %v243_v30 = vpop.xlane.xlu1 %242 }
 0x120   :  { %v209_v31 = vpop.xlane.xlu0 %208 }
 0x121   :  { %v210_v33 = vmax.f32 %v206_v29, %v209_v31 }
 0x123   :  { %v1151_v34 = vmax.f32 %v1148_v32, %v210_v33  ;;  %v272_v33 = vld [vmem:[#allocation5] sm:$0xff] }
 0x125   :  { %v213_v35 = vsub.f32 %v1148_v32, %v1151_v34  ;;  %240 = vst.msk [vmem:[#allocation2] sm:$0xff] %vm110_vm2, %v1151_v34  ;;  %218 = vperm.xlu2 %853, %v1151_v34  }
 0x127   :  { %v246_v36 = vpop.xlane.xlu1 %245  ;;  %v214_v18 = vmul.f32 1.442695, %v213_v35 }
 0x128   :  { %v247_v38 = vmax.f32 %v243_v30, %v246_v36 }
 0x12a   :  { %v249_v39 = vmax.f32 %v248_v37, %v247_v38 }
 0x12c   :  { %v250_v40 = vsub.f32 %v248_v37, %v249_v39  ;;  %276 = vst.msk [vmem:[#allocation4] sm:$0xff] %vm110_vm2, %v249_v39 }
 0x12d   :  { %255 = vperm.xlu2 %853, %v249_v39  }
 0x12e   :  { %v251_v21 = vmul.f32 1.442695, %v250_v40 }
 0x17f   :  { %v219_v42 = vpop.permute.xlu2 %218 }
 0x180   :  { %v221_v43 = vsub.f32 %v143_v12, %v219_v42  ;;  %v228_v44 = vsub.f32 %v160_v14, %v219_v42  ;;  %v282_v12 = vmul.f32 %v1129_v7, %v1127_v6  ;;  %v429_v14 = vsel %vm330_vm4, %v428_v11, 0.0 }
 0x182   :  { %v222_v47 = vmul.f32 1.442695, %v221_v43  ;;  %v229_v48 = vmul.f32 1.442695, %v228_v44  ;;  %v283_v15 = vsel %vm123_vm0, %v282_v12, 0.0 }
 0x184   :  { %855 = vpow2.f32 %v222_v47 }
 0x185   :  { %857 = vpow2.f32 %v229_v48  ;;  %v294_v48 = vld [vmem:[#allocation2] sm:$0xff] }
 0x187   :  { %v256_v49 = vpop.permute.xlu2 %255 }
 0x188   :  { %v258_v50 = vsub.f32 %v177_v17, %v256_v49  ;;  %v264_v51 = vsub.f32 %v191_v22, %v256_v49  ;;  %v430_v17 = vrot.slane %v429_v14, 4 }
 0x18a   :  { %v856_v54 = vpop.eup %855  ;;  %v259_v55 = vmul.f32 1.442695, %v258_v50  ;;  %v265_v56 = vmul.f32 1.442695, %v264_v51  ;;  %v431_v19 = vadd.f32 %v430_v17, %v429_v14 }
 0x18b   :  { %v858_v57 = vpop.eup %857  ;;  %v224_v58 = vmul.f32 %v856_v54, %v202_v53  ;;  %v447_v54 = vmul.f32 %v1188_v52, %v1188_v52 }
 0x18c   :  { %859 = vpow2.f32 %v259_v55  ;;  %v231_v59 = vsel %vm203_vm1, %v858_v57, 0.0  ;;  %v432_v20 = vrot.slane %v431_v19, 2 }
 0x18d   :  { %861 = vpow2.f32 %v265_v56  ;;  %232 = vadd.xlane.f32.xlu1 %v231_v59  ;;  %v225_v60 = vsel %vm203_vm1, %v224_v58, 0.0  ;;  %v448_v57 = vsel %vm330_vm4, %v447_v54, 0.0 }
 0x18e   :  { %226 = vadd.xlane.f32.xlu0 %v225_v60  ;;  %863 = vpow2.f32 %v214_v18  ;;  %v433_v6 = vadd.f32 %v432_v20, %v431_v19  ;;  %v449_v59 = vrot.slane %v448_v57, 4 }
 0x18f   :  { %865 = vpow2.f32 %v251_v21 }
 0x190   :  { %v434_v28 = vrot.slane %v433_v6, 1 }
 0x192   :  { %v860_v61 = vpop.eup %859  ;;  %v435_v30 = vadd.f32 %v434_v28, %v433_v6 }
 0x193   :  { %v862_v62 = vpop.eup %861  ;;  %v261_v63 = vsel %vm203_vm1, %v860_v61, 0.0  ;;  %v450_v61 = vadd.f32 %v449_v59, %v448_v57 }
 0x194   :  { %262 = vadd.xlane.f32.xlu2 %v261_v63  ;;  %v267_v0 = vmul.f32 %v862_v62, %v202_v53  ;;  %v864_v22 = vpop.eup %863  ;;  %v436_v31 = vmax.f32 %v435_v30, 1e-16  ;;  %v309_v63 = vld [vmem:[#allocation4] sm:$0xff] }
 0x195   :  { %284 = vadd.xlane.f32.xlu1 %v283_v15  ;;  %v236_v26 = vmul.f32 %v864_v22, %v235_v23  ;;  %v866_v32 = vpop.eup %865 }
 0x196   :  { %v268_v1 = vsel %vm203_vm1, %v267_v0, 0.0  ;;  %867 = vrsqrt.f32 %v436_v31  ;;  %v273_v36 = vmul.f32 %v866_v32, %v272_v33  ;;  %vm443_vm6 = vweird.f32 %v436_v31 }
 0x197   :  { %269 = vadd.xlane.f32.xlu0 %v268_v1  ;;  %v451_v0 = vrot.slane %v450_v61, 2 }
 0x199   :  { %v452_v3 = vadd.f32 %v451_v0, %v450_v61 }
 0x19b   :  { %v453_v5 = vrot.slane %v452_v3, 1 }
 0x19c   :  { %v868_v40 = vpop.eup %867 }
 0x19d   :  { %v438_v41 = vmul.f32 %v868_v40, %v436_v31  ;;  %vm444_vm7 = vweird.f32 %v868_v40  ;;  %v454_v8 = vadd.f32 %v453_v5, %v452_v3  ;;  %v636_v5 = vadd.s32 8, %v1159_v45 }
 0x19e   :  { %vm445_vm8 = vmor %vm443_vm6, %vm444_vm7 }
 0x19f   :  { %340 = vadd.xlane.f32.xlu0 %v339_v16  ;;  %v439_v42 = vmul.f32 %v868_v40, %v438_v41  ;;  %v455_v9 = vmax.f32 %v454_v8, 1e-16  ;;  %vm637_vm12 = vcmp.eq.s32.totalorder %v636_v5, %v1161_v46 }
 0x1a1   :  { %v440_v44 = vmul.f32 0.5, %v439_v42  ;;  %vm462_vm9 = vweird.f32 %v455_v9 }
 0x1a3   :  { %v441_v50 = vsub.f32 1.5, %v440_v44 }
 0x1a5   :  { %v442_v53 = vmul.f32 %v868_v40, %v441_v50 }
 0x1a7   :  { %v446_v56 = vsel %vm445_vm8, %v868_v40, %v442_v53 }
 0x1a8   :  { %v1195_v58 = vmul.f32 %v446_v56, %v1172_v2 }
 0x1aa   :  { %521 = vmatpush.msrb.mxu0 %v1195_v58  ;;  %605 = vmatpush.msrb.mxu2 %v1195_v58 }
 0x200   :  { %v233_v7 = vpop.xlane.xlu1 %232 }
 0x201   :  { %v227_v24 = vpop.xlane.xlu0 %226 }
 0x202   :  { %v234_v25 = vadd.f32 %v233_v7, %v227_v24 }
 0x204   :  { %v237_v29 = vadd.f32 %v236_v26, %v234_v25 }
 0x206   :  { %239 = vst.msk [vmem:[#allocation3] sm:$0xff] %vm110_vm2, %v237_v29 }
 0x207   :  { %v263_v34 = vpop.xlane.xlu2 %262 }
 0x208   :  { %v285_v18 = vpop.xlane.xlu1 %284 }
 0x209   :  { %v286_v19 = vrot.slane %v285_v18, 4 }
 0x20a   :  { %v270_v35 = vpop.xlane.xlu0 %269 }
 0x20b   :  { %v271_v37 = vadd.f32 %v270_v35, %v263_v34  ;;  %v287_v20 = vadd.f32 %v286_v19, %v285_v18 }
 0x20d   :  { %v274_v38 = vadd.f32 %v273_v36, %v271_v37  ;;  %v295_v39 = vld [vmem:[#allocation3] sm:$0xff]  ;;  %v288_v21 = vrot.slane %v287_v20, 2 }
 0x20e   :  { %869 = vlog2.f32 %v295_v39 }
 0x20f   :  { %275 = vst.msk [vmem:[#allocation5] sm:$0xff] %vm110_vm2, %v274_v38  ;;  %v289_v22 = vadd.f32 %v288_v21, %v287_v20 }
 0x211   :  { %v290_v23 = vrot.slane %v289_v22, 1 }
 0x212   :  { %v341_v7 = vpop.xlane.xlu0 %340 }
 0x213   :  { %v291_v6 = vadd.f32 %v290_v23, %v289_v22  ;;  %v342_v25 = vrot.slane %v341_v7, 4 }
 0x214   :  { %v870_v43 = vpop.eup %869 }
 0x215   :  { %v297_v47 = vmul.f32 0.6931472, %v870_v43  ;;  %820 = vpush %v291_v6  ;;  %v343_v29 = vadd.f32 %v342_v25, %v341_v7 }
 0x216   :  { %v310_v49 = vld [vmem:[#allocation5] sm:$0xff] }
 0x217   :  { %v298_v51 = vadd.f32 %v297_v47, %v294_v48  ;;  %871 = vlog2.f32 %v310_v49  ;;  %v344_v32 = vrot.slane %v343_v29, 2  ;;  %v380_v48 = vsel %vm330_vm4, %v1188_v52, 0.0 }
 0x218   :  { %873 = vrsqrt.f32 %v455_v9  ;;  %v381_v49 = vrot.slane %v380_v48, 4 }
 0x219   :  { %v299_v55 = vsel %vm110_vm2, %v298_v51, 0.0  ;;  %v345_v38 = vadd.f32 %v344_v32, %v343_v29 }
 0x21a   :  { %300 = vadd.xlane.f32.xlu0 %v299_v55  ;;  %v382_v50 = vadd.f32 %v381_v49, %v380_v48 }
 0x21b   :  { %v346_v41 = vrot.slane %v345_v38, 1 }
 0x21d   :  { %v872_v60 = vpop.eup %871  ;;  %v347_v44 = vadd.f32 %v346_v41, %v345_v38 }
 0x21e   :  { %v312_v62 = vmul.f32 0.6931472, %v872_v60  ;;  %v874_v2 = vpop.eup %873 }
 0x21f   :  { %v457_v10 = vmul.f32 %v874_v2, %v455_v9  ;;  %vm463_vm10 = vweird.f32 %v874_v2 }
 0x220   :  { %v313_v1 = vadd.f32 %v312_v62, %v309_v63  ;;  %vm464_vm11 = vmor %vm462_vm9, %vm463_vm10  ;;  %vm744_vm9 = vcmask 1024  }
 0x221   :  { %v458_v11 = vmul.f32 %v874_v2, %v457_v10 }
 0x222   :  { %v314_v4 = vsel %vm110_vm2, %v313_v1, 0.0 }
 0x223   :  { %315 = vadd.xlane.f32.xlu1 %v314_v4  ;;  %v459_v12 = vmul.f32 0.5, %v458_v11 }
 0x225   :  { %v460_v14 = vsub.f32 1.5, %v459_v12 }
 0x227   :  { %v461_v15 = vmul.f32 %v874_v2, %v460_v14 }
 0x229   :  { %v465_v16 = vsel %vm464_vm11, %v874_v2, %v461_v15 }
 0x22a   :  { %v1201_v17 = vmul.f32 %v465_v16, %v1188_v52 }
 0x22c   :  { %544 = vmatpush.msrb.mxu1 %v1201_v17  ;;  %628 = vmatpush.msrb.mxu3 %v1201_v17 }
 0x243   :  { %468 = vxpose.xlu0.b32.start.end [1/1] (short) (narrow) %v1195_v58, 16 }
 0x246   :  { %s821_s4 = spop %820 }
 0x247   :  { %s293_s5 = smul.f32 2.0, %s821_s4 }
 0x249   :  { %s325_s25 = smul.f32 2.0, %s293_s5 }
 0x25d   :  { %552 = vxpose.xlu1.b32.start.end [1/1] (short) (narrow) %v1201_v17, 16 }
 0x28d   :  { %v301_v24 = vpop.xlane.xlu0 %300 }
 0x28e   :  { %v302_v26 = vrot.slane %v301_v24, 4 }
 0x290   :  { %v303_v28 = vadd.f32 %v302_v26, %v301_v24 }
 0x292   :  { %v304_v30 = vrot.slane %v303_v28, 2 }
 0x294   :  { %v305_v31 = vadd.f32 %v304_v30, %v303_v28 }
 0x296   :  { %v316_v33 = vpop.xlane.xlu1 %315  ;;  %v306_v34 = vrot.slane %v305_v31, 1 }
 0x297   :  { %v317_v35 = vrot.slane %v316_v33, 4 }
 0x298   :  { %v307_v36 = vadd.f32 %v306_v34, %v305_v31 }
 0x299   :  { %v318_v37 = vadd.f32 %v317_v35, %v316_v33 }
 0x29a   :  { %822 = vpush %v307_v36 }
 0x29b   :  { %v319_v39 = vrot.slane %v318_v37, 2 }
 0x29d   :  { %v320_v40 = vadd.f32 %v319_v39, %v318_v37 }
 0x29f   :  { %v321_v42 = vrot.slane %v320_v40, 1 }
 0x2a1   :  { %v322_v43 = vadd.f32 %v321_v42, %v320_v40 }
 0x2a3   :  { %824 = vpush %v322_v43 }
 0x2a4   :  { %826 = vpush %v347_v44 }
 0x2aa   :  { %854 = vset.pattern.permute.xlu0 %v1068_v27  ;;  %v383_v27 = vrot.slane %v382_v50, 2 }
 0x2ac   :  { %v384_v53 = vadd.f32 %v383_v27, %v382_v50 }
 0x2ae   :  { %v385_v54 = vrot.slane %v384_v53, 1 }
 0x2b0   :  { %v1216_v55 = vadd.f32 %v385_v54, %v384_v53 }
 0x2b2   :  { %v387_v56 = vsel %vm338_vm5, %v1216_v55, 0.0 }
 0x2b3   :  { %388 = vadd.xlane.f32.xlu2 %v387_v56 }
 0x2cb   :  { %s823_s23 = spop %822 }
 0x2d4   :  { %s825_s24 = spop %824 }
 0x2d5   :  { %s324_s26 = sadd.f32 %s825_s24, %s823_s23  ;;  %s827_s28 = spop %826 }
 0x2d6   :  { %v349_v59 = vstv %s827_s28 }
 0x2d7   :  { %s1208_s27 = ssub.f32 %s324_s26, %s325_s25  ;;  %875 = vrcp.f32 %v349_v59  ;;  %v361_v2 = vand.u32 2147483648, %v349_v59  ;;  %vm355_vm15 = vweird.f32 %v349_v59  ;;  %v359_v11 = vand.u32 2147483647, %v349_v59 }
 0x2d9   :  { %v362_v16 = vor.u32 1.1754944e-38, %v361_v2 }
 0x2dd   :  { %v876_v60 = vpop.eup %875 }
 0x2de   :  { %v351_v61 = vmul.f32 %v876_v60, %v349_v59  ;;  %vm356_vm13 = vweird.f32 %v876_v60 }
 0x2df   :  { %vm357_vm0 = vmor %vm355_vm15, %vm356_vm13 }
 0x2e0   :  { %v352_v62 = vsub.f32 1.0, %v351_v61 }
 0x2e2   :  { %v353_v8 = vmul.f32 %v876_v60, %v352_v62 }
 0x2e4   :  { %v354_v9 = vadd.f32 %v876_v60, %v353_v8 }
 0x2e6   :  { %v358_v15 = vsel %vm357_vm0, %v876_v60, %v354_v9 }
 0x2e7   :  { %v484_v47 = vpop.trf.xlu0 }
 0x2e8   :  { %812 = vmatmul.msk.f32.vlgmr.msrb.gmra.mxu0 %vm203_vm1, %v484_v47  ;;  %814 = vmatmul.msk.f32.vlgmr.msrb.gmra.mxu1 %vm203_vm1, %v484_v47 }
 0x2ef   :  { %v485_v51 = vpop.trf.xlu0 }
 0x2f0   :  { %813 = vmatmul.msk.f32.gmra.mxu0 %vm203_vm1, %v485_v51  ;;  %815 = vmatmul.msk.f32.gmra.mxu1 %vm203_vm1, %v485_v51 }
 0x301   :  { %v568_v57 = vpop.trf.xlu1 }
 0x302   :  { %816 = vmatmul.msk.f32.vlgmr.msrb.gmra.mxu2 %vm203_vm1, %v568_v57  ;;  %818 = vmatmul.msk.f32.vlgmr.msrb.gmra.mxu3 %vm203_vm1, %v568_v57 }
 0x309   :  { %v569_v52 = vpop.trf.xlu1 }
 0x30a   :  { %817 = vmatmul.msk.f32.gmra.mxu2 %vm203_vm1, %v569_v52  ;;  %819 = vmatmul.msk.f32.gmra.mxu3 %vm203_vm1, %v569_v52  ;;  %vm360_vm1 = vcmp.eq.f32.partialorder %v359_v11, 8.507059e+37 }
 0x30b   :  { %v363_v18 = vsel %vm360_vm1, %v362_v16, %v358_v15 }
 0x30c   :  { %v364_v20 = vmul.f32 %v363_v18, %v1180_v13 }
 0x30e   :  { %v365_v22 = vmax.f32 %v364_v20, 1e-12 }
 0x310   :  { %877 = vlog2.f32 %v365_v22 }
 0x316   :  { %v878_v23 = vpop.eup %877 }
 0x317   :  { %v367_v25 = vmul.f32 0.6931472, %v878_v23 }
 0x319   :  { %v368_v26 = vmul.f32 %v367_v25, %v365_v22 }
 0x31b   :  { %v369_v29 = vsel %vm338_vm5, %v368_v26, 0.0 }
 0x326   :  { %v389_v34 = vpop.xlane.xlu2 %388 }
 0x327   :  { %v390_v54 = vrot.slane %v389_v34, 4 }
 0x329   :  { %v391_v59 = vadd.f32 %v390_v54, %v389_v34 }
 0x32b   :  { %v392_v61 = vrot.slane %v391_v59, 2 }
 0x365   :  { %v523_v63 = vpop.f32.mrf.mxu0  ;;  %v1224_v0 = vpop.f32.mrf.mxu1 }
 0x366   :  { %v638_v1 = vsel %vm196_vm3, -1e+30, %v523_v63  ;;  %v649_v3 = vsel %vm330_vm4, %v1224_v0, -inf }
 0x367   :  { %650 = vmax.xlane.f32.xlu0 %v649_v3  ;;  %v642_v4 = vsel %vm330_vm4, %v638_v1, -inf  ;;  %v393_v3 = vadd.f32 %v392_v61, %v391_v59 }
 0x368   :  { %643 = vmax.xlane.f32.xlu2 %v642_v4 }
 0x369   :  { %v394_v2 = vrot.slane %v393_v3, 1 }
 0x36b   :  { %v395_v15 = vadd.f32 %v394_v2, %v393_v3 }
 0x36d   :  { %v526_v10 = vpop.f32.mrf.mxu0  ;;  %v549_v19 = vpop.f32.mrf.mxu1 }
 0x36e   :  { %v639_v12 = vsel %vm637_vm12, -1e+30, %v526_v10  ;;  %v652_v21 = vsel %vm645_vm14, %v549_v19, -inf }
 0x36f   :  { %v646_v14 = vsel %vm645_vm14, %v639_v12, -inf }
 0x370   :  { %647 = vmax.xlane.f32.xlu2 %v646_v14 }
 0x378   :  { %653 = vmax.xlane.f32.xlu2 %v652_v21 }
 0x385   :  { %v630_v6 = vpop.f32.mrf.mxu3  ;;  %v1253_v45 = vpop.f32.mrf.mxu2 }
 0x386   :  { %v1242_v7 = vsel %vm196_vm3, -1e+30, %v630_v6  ;;  %v695_v31 = vsel %vm330_vm4, %v1253_v45, -inf }
 0x387   :  { %v689_v24 = vsel %vm330_vm4, %v1242_v7, -inf }
 0x388   :  { %690 = vmax.xlane.f32.xlu2 %v689_v24 }
 0x38d   :  { %v633_v28 = vpop.f32.mrf.mxu3  ;;  %v1257_v32 = vpop.f32.mrf.mxu2 }
 0x38e   :  { %v1248_v13 = vsel %vm637_vm12, -1e+30, %v633_v28  ;;  %v698_v33 = vsel %vm645_vm14, %v1257_v32, -inf }
 0x38f   :  { %v692_v30 = vsel %vm645_vm14, %v1248_v13, -inf }
 0x390   :  { %370 = vadd.xlane.f32.xlu2 %v369_v29  ;;  %693 = vmax.xlane.f32.xlu1 %v692_v30 }
 0x398   :  { %696 = vmax.xlane.f32.xlu2 %v695_v31 }
 0x3a0   :  { %699 = vmax.xlane.f32.xlu2 %v698_v33 }
 0x3da   :  { %v651_v35 = vpop.xlane.xlu0 %650 }
 0x3db   :  { %v644_v36 = vpop.xlane.xlu2 %643 }
 0x3dc   :  { %v1261_v37 = vmax.f32 %v644_v36, %v651_v35 }
 0x3de   :  { %v657_v38 = vsub.f32 %v638_v1, %v1261_v37  ;;  %v669_v48 = vsub.f32 %v1224_v0, %v1261_v37 }
 0x3e0   :  { %v659_v39 = vmul.f32 1.442695, %v657_v38  ;;  %v671_v50 = vmul.f32 1.442695, %v669_v48 }
 0x3e2   :  { %879 = vpow2.f32 %v659_v39 }
 0x3e3   :  { %v648_v40 = vpop.xlane.xlu2 %647 }
 0x3e8   :  { %v880_v41 = vpop.eup %879 }
 0x3e9   :  { %v663_v42 = vsel %vm330_vm4, %v880_v41, 0.0 }
 0x3ea   :  { %664 = vadd.xlane.f32.xlu2 %v663_v42 }
 0x3eb   :  { %v654_v43 = vpop.xlane.xlu2 %653 }
 0x3ec   :  { %v1265_v44 = vmax.f32 %v648_v40, %v654_v43 }
 0x3ee   :  { %v658_v47 = vsub.f32 %v639_v12, %v1265_v44  ;;  %v670_v27 = vsub.f32 %v549_v19, %v1265_v44 }
 0x3f0   :  { %v661_v49 = vmul.f32 1.442695, %v658_v47  ;;  %v673_v57 = vmul.f32 1.442695, %v670_v27 }
 0x3f2   :  { %881 = vpow2.f32 %v661_v49 }
 0x3f3   :  { %883 = vpow2.f32 %v671_v50 }
 0x3f4   :  { %885 = vpow2.f32 %v673_v57  ;;  %v735_v57 = vmul.f32 %v1201_v17, %v1195_v58 }
 0x3f6   :  { %v736_v59 = vsel %vm330_vm4, %v735_v57, 0.0 }
 0x3f8   :  { %v882_v51 = vpop.eup %881 }
 0x3f9   :  { %v666_v53 = vsel %vm645_vm14, %v882_v51, 0.0  ;;  %v884_v52 = vpop.eup %883 }
 0x3fa   :  { %667 = vadd.xlane.f32.xlu2 %v666_v53  ;;  %v675_v60 = vsel %vm330_vm4, %v884_v52, 0.0  ;;  %v886_v0 = vpop.eup %885 }
 0x3fb   :  { %v691_v56 = vpop.xlane.xlu2 %690  ;;  %v678_v5 = vsel %vm645_vm14, %v886_v0, 0.0 }
 0x402   :  { %676 = vadd.xlane.f32.xlu2 %v675_v60  ;;  %v737_v60 = vrot.slane %v736_v59, 4 }
 0x403   :  { %v371_v62 = vpop.xlane.xlu2 %370  ;;  %v694_v18 = vpop.xlane.xlu1 %693 }
 0x404   :  { %v372_v63 = vrot.slane %v371_v62, 4 }
 0x406   :  { %v373_v1 = vadd.f32 %v372_v63, %v371_v62  ;;  %v738_v62 = vadd.f32 %v737_v60, %v736_v59 }
 0x408   :  { %v374_v4 = vrot.slane %v373_v1, 2 }
 0x40a   :  { %679 = vadd.xlane.f32.xlu2 %v678_v5  ;;  %v375_v8 = vadd.f32 %v374_v4, %v373_v1 }
 0x40b   :  { %v697_v9 = vpop.xlane.xlu2 %696 }
 0x40c   :  { %v1274_v10 = vmax.f32 %v691_v56, %v697_v9  ;;  %v376_v11 = vrot.slane %v375_v8, 1 }
 0x40e   :  { %v703_v12 = vsub.f32 %v1242_v7, %v1274_v10  ;;  %v377_v14 = vadd.f32 %v376_v11, %v375_v8  ;;  %v715_v23 = vsub.f32 %v1253_v45, %v1274_v10 }
 0x410   :  { %v705_v16 = vmul.f32 1.442695, %v703_v12  ;;  %828 = vpush %v377_v14  ;;  %v717_v24 = vmul.f32 1.442695, %v715_v23 }
 0x411   :  { %830 = vpush %v395_v15 }
 0x412   :  { %887 = vpow2.f32 %v705_v16 }
 0x413   :  { %v700_v19 = vpop.xlane.xlu2 %699 }
 0x414   :  { %v1278_v20 = vmax.f32 %v694_v18, %v700_v19 }
 0x416   :  { %v704_v21 = vsub.f32 %v1248_v13, %v1278_v20  ;;  %v716_v26 = vsub.f32 %v1257_v32, %v1278_v20 }
 0x418   :  { %v888_v22 = vpop.eup %887  ;;  %v707_v6 = vmul.f32 1.442695, %v704_v21  ;;  %v719_v29 = vmul.f32 1.442695, %v716_v26 }
 0x419   :  { %v709_v7 = vsel %vm330_vm4, %v888_v22, 0.0 }
 0x41a   :  { %889 = vpow2.f32 %v707_v6  ;;  %710 = vadd.xlane.f32.xlu2 %v709_v7 }
 0x41b   :  { %891 = vpow2.f32 %v717_v24 }
 0x41c   :  { %893 = vpow2.f32 %v719_v29 }
 0x420   :  { %v890_v25 = vpop.eup %889 }
 0x421   :  { %v712_v28 = vsel %vm645_vm14, %v890_v25, 0.0  ;;  %v892_v13 = vpop.eup %891 }
 0x422   :  { %713 = vadd.xlane.f32.xlu2 %v712_v28  ;;  %v721_v30 = vsel %vm330_vm4, %v892_v13, 0.0  ;;  %v894_v45 = vpop.eup %893  ;;  %vm794_vm4 = vcmp.eq.s32.totalorder %v1161_v46, 1 }
 0x423   :  { %v724_v31 = vsel %vm645_vm14, %v894_v45, 0.0 }
 0x42a   :  { %722 = vadd.xlane.f32.xlu2 %v721_v30 }
 0x432   :  { %725 = vadd.xlane.f32.xlu2 %v724_v31 }
 0x441   :  { %s1290_s29 = spop %828 }
 0x442   :  { %s831_s30 = spop %830  ;;  %s379_s3 = sadd.f32 2.3025851, %s1290_s29 }
 0x443   :  { %v397_v33 = vstv %s831_s30 }
 0x444   :  { %895 = vrcp.f32 %v397_v33  ;;  %v409_v41 = vand.u32 2147483648, %v397_v33  ;;  %vm403_vm6 = vweird.f32 %v397_v33  ;;  %v407_v42 = vand.u32 2147483647, %v397_v33 }
 0x446   :  { %v410_v49 = vor.u32 1.1754944e-38, %v409_v41  ;;  %vm408_vm8 = vcmp.eq.f32.partialorder %v407_v42, 8.507059e+37 }
 0x44a   :  { %v896_v34 = vpop.eup %895 }
 0x44b   :  { %v399_v35 = vmul.f32 %v896_v34, %v397_v33  ;;  %vm404_vm3 = vweird.f32 %v896_v34 }
 0x44c   :  { %vm405_vm7 = vmor %vm403_vm6, %vm404_vm3 }
 0x44d   :  { %v400_v36 = vsub.f32 1.0, %v399_v35 }
 0x44f   :  { %v401_v39 = vmul.f32 %v896_v34, %v400_v36 }
 0x451   :  { %v402_v40 = vadd.f32 %v896_v34, %v401_v39 }
 0x453   :  { %v406_v48 = vsel %vm405_vm7, %v896_v34, %v402_v40  ;;  %v1071_v40 = vmov 20.0  }
 0x454   :  { %v411_v50 = vsel %vm408_vm8, %v410_v49, %v406_v48 }
 0x455   :  { %v412_v51 = vmul.f32 %v411_v50, %v1216_v55  ;;  %v739_v55 = vrot.slane %v738_v62, 2 }
 0x457   :  { %v413_v56 = vmax.f32 %v412_v51, 1e-12  ;;  %v740_v4 = vadd.f32 %v739_v55, %v738_v62 }
 0x459   :  { %v741_v8 = vrot.slane %v740_v4, 1 }
 0x45b   :  { %v742_v11 = vadd.f32 %v741_v8, %v740_v4 }
 0x45d   :  { %v665_v32 = vpop.xlane.xlu2 %664  ;;  %v769_v12 = vsel %vm338_vm5, %v742_v11, 0.0 }
 0x45e   :  { %770 = vadd.xlane.f32.xlu1 %v769_v12 }
 0x46d   :  { %v668_v38 = vpop.xlane.xlu2 %667 }
 0x475   :  { %v677_v43 = vpop.xlane.xlu2 %676 }
 0x476   :  { %v681_v47 = vadd.f32 %v677_v43, %v665_v32 }
 0x478   :  { %897 = vlog2.f32 %v681_v47 }
 0x47d   :  { %v680_v27 = vpop.xlane.xlu2 %679 }
 0x47e   :  { %v682_v53 = vadd.f32 %v680_v27, %v668_v38  ;;  %v898_v54 = vpop.eup %897 }
 0x47f   :  { %v684_v52 = vmul.f32 0.6931472, %v898_v54 }
 0x480   :  { %899 = vlog2.f32 %v682_v53 }
 0x481   :  { %901 = vlog2.f32 %v413_v56  ;;  %v687_v0 = vadd.f32 %v684_v52, %v1261_v37 }
 0x483   :  { %v743_v5 = vsel %vm110_vm2, %v687_v0, 0.0 }
 0x486   :  { %v900_v61 = vpop.eup %899 }
 0x487   :  { %v686_v63 = vmul.f32 0.6931472, %v900_v61  ;;  %v902_v3 = vpop.eup %901 }
 0x488   :  { %v415_v2 = vmul.f32 0.6931472, %v902_v3 }
 0x489   :  { %v688_v1 = vadd.f32 %v686_v63, %v1265_v44 }
 0x48a   :  { %v416_v14 = vmul.f32 %v415_v2, %v413_v56 }
 0x48b   :  { %v745_v58 = vsel %vm744_vm9, %v688_v1, 0.0  ;;  %v797_v1 = vstv %s1208_s27 }
 0x48c   :  { %v746_v17 = vadd.f32 %v745_v58, %v743_v5  ;;  %v417_v15 = vsel %vm338_vm5, %v416_v14, 0.0  ;;  %vm793_vm5 = vcmp.eq.s32.totalorder %v1161_v46, 0 }
 0x48d   :  { %v711_v9 = vpop.xlane.xlu2 %710 }
 0x48e   :  { %747 = vadd.xlane.f32.xlu2 %v746_v17 }
 0x495   :  { %v714_v37 = vpop.xlane.xlu2 %713 }
 0x496   :  { %418 = vadd.xlane.f32.xlu2 %v417_v15 }
 0x49d   :  { %v723_v44 = vpop.xlane.xlu2 %722 }
 0x49e   :  { %v727_v16 = vadd.f32 %v723_v44, %v711_v9 }
 0x4a0   :  { %903 = vlog2.f32 %v727_v16 }
 0x4a5   :  { %v726_v18 = vpop.xlane.xlu2 %725 }
 0x4a6   :  { %v728_v19 = vadd.f32 %v726_v18, %v714_v37  ;;  %v904_v21 = vpop.eup %903 }
 0x4a7   :  { %v730_v22 = vmul.f32 0.6931472, %v904_v21 }
 0x4a8   :  { %905 = vlog2.f32 %v728_v19 }
 0x4a9   :  { %v733_v7 = vadd.f32 %v730_v22, %v1274_v10  ;;  %907 = vrcp.f32 %v1071_v40 }
 0x4ab   :  { %v756_v25 = vsel %vm110_vm2, %v733_v7, 0.0 }
 0x4ae   :  { %v906_v23 = vpop.eup %905 }
 0x4af   :  { %v732_v6 = vmul.f32 0.6931472, %v906_v23  ;;  %v908_v43 = vpop.eup %907 }
 0x4b0   :  { %v782_v48 = vmul.f32 20.0, %v908_v43  ;;  %vm786_vm2 = vweird.f32 %v908_v43 }
 0x4b1   :  { %v734_v24 = vadd.f32 %v732_v6, %v1278_v20 }
 0x4b2   :  { %v783_v51 = vsub.f32 1.0, %v782_v48 }
 0x4b3   :  { %v757_v26 = vsel %vm744_vm9, %v734_v24, 0.0 }
 0x4b4   :  { %v758_v28 = vadd.f32 %v757_v26, %v756_v25  ;;  %v784_v56 = vmul.f32 %v908_v43, %v783_v51 }
 0x4b6   :  { %759 = vadd.xlane.f32.xlu2 %v758_v28  ;;  %v785_v60 = vadd.f32 %v908_v43, %v784_v56 }
 0x4b8   :  { %v787_v0 = vsel %vm786_vm2, %v908_v43, %v785_v60 }
 0x4d1   :  { %v771_v41 = vpop.xlane.xlu1 %770 }
 0x4d2   :  { %v772_v42 = vrot.slane %v771_v41, 4 }
 0x4d4   :  { %v773_v47 = vadd.f32 %v772_v42, %v771_v41 }
 0x4d6   :  { %v774_v49 = vrot.slane %v773_v47, 2 }
 0x4d8   :  { %v775_v54 = vadd.f32 %v774_v49, %v773_v47 }
 0x4da   :  { %v776_v59 = vrot.slane %v775_v54, 1 }
 0x4dc   :  { %v777_v63 = vadd.f32 %v776_v59, %v775_v54 }
 0x501   :  { %v748_v29 = vpop.xlane.xlu2 %747 }
 0x502   :  { %v749_v13 = vrot.slane %v748_v29, 4 }
 0x504   :  { %v750_v30 = vadd.f32 %v749_v13, %v748_v29 }
 0x506   :  { %v751_v45 = vrot.slane %v750_v30, 2 }
 0x508   :  { %v752_v32 = vadd.f32 %v751_v45, %v750_v30 }
 0x509   :  { %v419_v31 = vpop.xlane.xlu2 %418 }
 0x50a   :  { %v420_v33 = vrot.slane %v419_v31, 4  ;;  %v753_v38 = vrot.slane %v752_v32, 1 }
 0x50c   :  { %v421_v34 = vadd.f32 %v420_v33, %v419_v31  ;;  %v754_v20 = vadd.f32 %v753_v38, %v752_v32 }
 0x50e   :  { %v422_v35 = vrot.slane %v421_v34, 2 }
 0x510   :  { %v423_v36 = vadd.f32 %v422_v35, %v421_v34 }
 0x512   :  { %v424_v10 = vrot.slane %v423_v36, 1 }
 0x514   :  { %v425_v39 = vadd.f32 %v424_v10, %v423_v36 }
 0x516   :  { %832 = vpush %v425_v39 }
 0x517   :  { %834 = vpush %v754_v20 }
 0x529   :  { %v760_v50 = vpop.xlane.xlu2 %759 }
 0x52a   :  { %v761_v27 = vrot.slane %v760_v50, 4 }
 0x52c   :  { %v762_v53 = vadd.f32 %v761_v27, %v760_v50 }
 0x52e   :  { %v763_v57 = vrot.slane %v762_v53, 2 }
 0x530   :  { %v764_v52 = vadd.f32 %v763_v57, %v762_v53 }
 0x532   :  { %v765_v61 = vrot.slane %v764_v52, 1 }
 0x534   :  { %v766_v62 = vadd.f32 %v765_v61, %v764_v52 }
 0x536   :  { %836 = vpush %v766_v62 }
 0x537   :  { %838 = vpush %v777_v63 }
 0x538   :  { %840 = vpush %v787_v0 }
 0x547   :  { %s833_s7 = spop %832 }
 0x548   :  { %s835_s8 = spop %834  ;;  %s427_s15 = sadd.f32 2.3025851, %s833_s7 }
 0x567   :  { %s837_s9 = spop %836 }
 0x568   :  { %s768_s1 = sadd.f32 %s837_s9, %s835_s8  ;;  %s839_s10 = spop %838 }
 0x569   :  { %s779_s11 = smul.f32 2.0, %s839_s10  ;;  %s841_s12 = spop %840 }
 0x56b   :  { %s780_s13 = ssub.f32 %s768_s1, %s779_s11 }
 0x56d   :  { %s789_s14 = smul.f32 %s841_s12, %s780_s13 }
 0x56f   :  { %s790_s16 = sadd.f32 %s789_s14, %s379_s3 }
 0x571   :  { %s791_s17 = sadd.f32 %s790_s16, %s427_s15 }
 0x573   :  { %v795_v55 = vstv %s791_s17 }
 0x574   :  { %v796_v3 = vsel %vm794_vm4, %v795_v55, 0.0 }
 0x575   :  { %v798_v4 = vsel %vm793_vm5, %v797_v1, %v796_v3 }
 0x576   :  { %799 = vst [vmem:[%s1319_s6] sm:$0xff] %v798_v4 }
 0x577   :  { %804 = vsyncpa [#allocation7], 1 }
 0x578   :  { %805 = vsyncpa [#allocation9], 1 }
 0x579   :  { %806 = vsyncpa [#allocation12], 1 }
 0x57a   :  { %807 = vsyncpa [#allocation15], 1 }

</bundles_post_ra>
